<compile_context>
chip_gen: v7x
topology: tpu7x:2x2x1
jax: 0.10.0
libtpu: 0.0.40
codegen_flags: <defaults>
</compile_context>

<pallas_src>
import jax
import jax.numpy as jnp
from jax.experimental import pallas as pl
from jax.experimental.pallas import tpu as pltpu


def _round_up(x, m):
    return ((x + m - 1) // m) * m


def _reorder_gates_ifgo_to_ifog(w, axis):
    """Permute 4H-sized gate blocks from PyTorch order [i,f,g,o] to [i,f,o,g]."""
    i_, f_, g_, o_ = jnp.split(w, 4, axis=axis)
    return jnp.concatenate([i_, f_, o_, g_], axis=axis)


# ----------------------------------------------------------------------------
# Fused kernel builder: all layers + time loop + fc1 + LogSoftmax in one call.
# ----------------------------------------------------------------------------
def _make_fused_kernel(n_layers, T, Bp, H):
    H3 = 3 * H

    def kernel(*refs):
        # -------- unpack refs (inputs..., outputs...) ------------------------
        x_ref = refs[0]                                    # (T*Bp, E) bf16, time-major
        idx = 1
        layers = []
        for _ in range(n_layers):
            layers.append((refs[idx], refs[idx + 1], refs[idx + 2]))
            idx += 3                                       # (in,4H) bf16, (H,4H) bf16, (1,4H) f32
        h0_ref, c0_ref = refs[idx], refs[idx + 1]
        idx += 2                                           # (L, Bp, H) f32 each
        fcw_ref, fcb_ref = refs[idx], refs[idx + 1]
        idx += 2                                           # (H, Op) bf16, (1, Op) f32
        out_ref, hN_ref, cN_ref = refs[idx], refs[idx + 1], refs[idx + 2]

        # Load every weight / bias exactly once (no per-step re-loads).
        wih = [layers[l][0][...] for l in range(n_layers)]
        whh = [layers[l][1][...] for l in range(n_layers)]
        bias = [layers[l][2][...] for l in range(n_layers)]

        # Hoisted, time-parallel layer-0 input projection: one MXU matmul for
        # all T steps (bf16 operands, f32 accumulation) + combined bias.
        xproj0 = (jnp.dot(x_ref[...], wih[0],
                          preferred_element_type=jnp.float32)
                  + bias[0])                               # (T*Bp, 4H) f32

        h = [h0_ref[l] for l in range(n_layers)]           # (Bp, H) f32
        c = [c0_ref[l] for l in range(n_layers)]

        # Wavefront over (t, layer): layer l+1 step t depends only on layer l
        # step t, so interleaving layers per step exposes L independent
        # recurrences to the scheduler (hides MXU push->pop and EUP latency).
        for t in range(T):
            inp = None
            for l in range(n_layers):
                h_b = h[l].astype(jnp.bfloat16)
                if l == 0:
                    g = xproj0[t * Bp:(t + 1) * Bp, :] + jnp.dot(
                        h_b, whh[0], preferred_element_type=jnp.float32)
                else:
                    g = (jnp.dot(inp, wih[l],
                                 preferred_element_type=jnp.float32)
                         + bias[l]
                         + jnp.dot(h_b, whh[l],
                                   preferred_element_type=jnp.float32))
                # Gates packed [i, f, o, g]: one 3H sigmoid + one H tanh.
                sig = jax.nn.sigmoid(g[:, :H3])
                g_g = jnp.tanh(g[:, H3:])
                i_g = sig[:, 0:H]
                f_g = sig[:, H:2 * H]
                o_g = sig[:, 2 * H:H3]
                c[l] = f_g * c[l] + i_g * g_g
                h[l] = o_g * jnp.tanh(c[l])
                inp = h[l].astype(jnp.bfloat16)            # feeds layer l+1, step t

        # Final hidden / cell states: one store per layer.
        for l in range(n_layers):
            hN_ref[l] = h[l]
            cN_ref[l] = c[l]

        # -------- fc1 + LogSoftmax(dim=1) epilogue (dropout is a no-op) ------
        # Padded output lanes carry a -1e30 bias: they neither win the max nor
        # contribute to the sum, and are sliced off in the wrapper.
        logits = (jnp.dot(h[n_layers - 1].astype(jnp.bfloat16), fcw_ref[...],
                          preferred_element_type=jnp.float32)
                  + fcb_ref[...])                          # (Bp, Op) f32
        m = jnp.max(logits, axis=-1, keepdims=True)
        lse = jnp.log(jnp.sum(jnp.exp(logits - m), axis=-1, keepdims=True)) + m
        out_ref[...] = (logits - lse).astype(out_ref.dtype)

    return kernel


# ----------------------------------------------------------------------------
# Model: parameter init + forward.
# ----------------------------------------------------------------------------
def init_params(key, vocab_size, output_size, embedding_dim, hidden_dim, n_layers):
    keys = jax.random.split(key, 2 + 5 * n_layers)
    k_it = iter(keys)
    # pretrained gensim word2vec table replaced by a deterministic random table
    embedding = jax.random.normal(next(k_it), (vocab_size, embedding_dim),
                                  jnp.float32) * 0.1
    lstm = []
    bound = 1.0 / (hidden_dim ** 0.5)
    for layer in range(n_layers):
        in_dim = embedding_dim if layer == 0 else hidden_dim
        w_ih = jax.random.uniform(next(k_it), (4 * hidden_dim, in_dim),
                                  jnp.float32, -bound, bound)
        w_hh = jax.random.uniform(next(k_it), (4 * hidden_dim, hidden_dim),
                                  jnp.float32, -bound, bound)
        b_ih = jax.random.uniform(next(k_it), (4 * hidden_dim,),
                                  jnp.float32, -bound, bound)
        b_hh = jax.random.uniform(next(k_it), (4 * hidden_dim,),
                                  jnp.float32, -bound, bound)
        # pre-transpose for the kernel, combine the two biases, and re-pack the
        # gate blocks [i,f,g,o] -> [i,f,o,g]; matmul weights stored as bf16.
        w_ih_t = _reorder_gates_ifgo_to_ifog(w_ih.T, axis=1).astype(jnp.bfloat16)
        w_hh_t = _reorder_gates_ifgo_to_ifog(w_hh.T, axis=1).astype(jnp.bfloat16)
        b = _reorder_gates_ifgo_to_ifog((b_ih + b_hh).reshape(1, -1), axis=1)
        lstm.append((w_ih_t, w_hh_t, b))
    fc_w = jax.random.uniform(next(k_it), (output_size, hidden_dim),
                              jnp.float32, -bound, bound)
    fc_b = jax.random.uniform(next(k_it), (output_size,),
                              jnp.float32, -bound, bound)
    return {"embedding": embedding, "lstm": lstm,
            "fc_w_t": fc_w.T, "fc_b": fc_b}


def init_hidden(batch_size, n_layers, hidden_dim):
    z = jnp.zeros((n_layers, batch_size, hidden_dim), jnp.float32)
    return (z, z)


@jax.jit
def forward(params, x_ids, hidden):
    """x_ids: (B, T) int32, hidden: ((L,B,H),(L,B,H)) -> ((B,O), (h_n, c_n))."""
    h0_all, c0_all = hidden
    L, B, H = h0_all.shape
    T = x_ids.shape[1]
    E = params["embedding"].shape[1]
    O = params["fc_w_t"].shape[1]

    # Alignment padding (perf): batch -> 8 sublanes, fc output -> 128 lanes.
    Bp = max(8, _round_up(B, 8))
    Op = max(128, _round_up(O, 128))

    # Embedding lookup + time-major flatten (plain-JAX glue outside the kernel).
    embeds = jnp.take(params["embedding"], x_ids, axis=0)        # (B, T, E)
    x_tme = jnp.transpose(embeds, (1, 0, 2))                     # (T, B, E)
    x_tme = jnp.pad(x_tme, ((0, 0), (0, Bp - B), (0, 0)))
    x2d = x_tme.reshape(T * Bp, E).astype(jnp.bfloat16)          # (T*Bp, E)

    h0p = jnp.pad(h0_all, ((0, 0), (0, Bp - B), (0, 0)))
    c0p = jnp.pad(c0_all, ((0, 0), (0, Bp - B), (0, 0)))

    # Lane-dense fc1: zero-pad weight columns, -1e30-pad bias so padded logits
    # vanish in the log-softmax; real (B, O) block is sliced out below.
    fcw = jnp.pad(params["fc_w_t"], ((0, 0), (0, Op - O))).astype(jnp.bfloat16)
    fcb = jnp.pad(params["fc_b"], (0, Op - O),
                  constant_values=-1e30).reshape(1, Op)

    kernel = _make_fused_kernel(L, T, Bp, H)

    inputs = [x2d]
    for (w_ih_t, w_hh_t, b) in params["lstm"]:
        inputs += [w_ih_t, w_hh_t, b]
    inputs += [h0p, c0p, fcw, fcb]

    out_shapes = (
        jax.ShapeDtypeStruct((Bp, Op), jnp.float32),   # padded log-softmax out
        jax.ShapeDtypeStruct((L, Bp, H), jnp.float32), # h_n (padded batch)
        jax.ShapeDtypeStruct((L, Bp, H), jnp.float32), # c_n (padded batch)
    )
    vmem = pltpu.MemorySpace.VMEM
    out_p, h_np, c_np = pl.pallas_call(
        kernel,
        out_shape=out_shapes,
        in_specs=[pl.BlockSpec(memory_space=vmem) for _ in inputs],
        out_specs=tuple(pl.BlockSpec(memory_space=vmem) for _ in range(3)),
    )(*inputs)
    # dropout in the reference forward does not affect the output path (no-op)
    return out_p[:B, :O], (h_np[:, :B], c_np[:, :B])


# ----------------------------------------------------------------------------
# Pure-JAX f32 reference (for numerical validation only).
# ----------------------------------------------------------------------------
def _reference_forward(params, x_ids, hidden):
    h_all, c_all = hidden
    L, B, H = h_all.shape
    T = x_ids.shape[1]
    H3 = 3 * H
    embeds = jnp.take(params["embedding"], x_ids, axis=0)        # (B, T, E)
    layer_in = jnp.transpose(embeds, (1, 0, 2))                  # (T, B, E)
    h = [h_all[l] for l in range(L)]
    c = [c_all[l] for l in range(L)]
    for l in range(L):
        w_ih_t = params["lstm"][l][0].astype(jnp.float32)
        w_hh_t = params["lstm"][l][1].astype(jnp.float32)
        b = params["lstm"][l][2]
        hh, cc = h[l], c[l]
        outs = []
        for t in range(T):
            g = layer_in[t] @ w_ih_t + b + hh @ w_hh_t
            sig = jax.nn.sigmoid(g[:, :H3])
            i_g, f_g, o_g = sig[:, :H], sig[:, H:2 * H], sig[:, 2 * H:H3]
            g_g = jnp.tanh(g[:, H3:])
            cc = f_g * cc + i_g * g_g
            hh = o_g * jnp.tanh(cc)
            outs.append(hh)
        layer_in = jnp.stack(outs, axis=0)
        h[l], c[l] = hh, cc
    logits = layer_in[-1] @ params["fc_w_t"] + params["fc_b"]
    log_probs = jax.nn.log_softmax(logits, axis=1)
    return log_probs, (jnp.stack(h), jnp.stack(c))


if __name__ == "__main__":
    vocab_size, output_size = 50, 3
    embedding_dim, hidden_dim, n_layers = 32, 32, 2
    batch, seq = 2, 8

    key = jax.random.PRNGKey(0)
    k_params, k_ids = jax.random.split(key)
    params = init_params(k_params, vocab_size, output_size,
                         embedding_dim, hidden_dim, n_layers)
    x_ids = jax.random.randint(k_ids, (batch, seq), 0, vocab_size, jnp.int32)
    hidden = init_hidden(batch, n_layers, hidden_dim)

    log_probs, (h_n, c_n) = forward(params, x_ids, hidden)
    jax.block_until_ready((log_probs, h_n, c_n))

    assert log_probs.shape == (batch, output_size)
    assert h_n.shape == (n_layers, batch, hidden_dim)
    assert c_n.shape == (n_layers, batch, hidden_dim)
    # log-softmax rows must sum (in prob space) to 1
    assert bool(jnp.allclose(jnp.sum(jnp.exp(log_probs), axis=1), 1.0, atol=1e-4))
    assert bool(jnp.all(jnp.isfinite(log_probs)))
    assert bool(jnp.all(jnp.isfinite(h_n))) and bool(jnp.all(jnp.isfinite(c_n)))

    # Numerical check vs a pure-JAX f32 reference (bf16 matmuls -> loose tol).
    ref_lp, (ref_h, ref_c) = _reference_forward(params, x_ids, hidden)
    assert bool(jnp.allclose(log_probs, ref_lp, atol=1e-1, rtol=1e-1))
    assert bool(jnp.allclose(h_n, ref_h, atol=1e-1, rtol=1e-1))
    assert bool(jnp.allclose(c_n, ref_c, atol=1e-1, rtol=1e-1))
    print("KERNEL_OK")
</pallas_src>

<mosaic_0001>
module attributes {stable_mosaic.version = 11 : i64} {
  func.func @kernel(%arg0: memref<64x32xbf16, #tpu.memory_space<vmem>>, %arg1: memref<32x128xbf16, #tpu.memory_space<vmem>>, %arg2: memref<32x128xbf16, #tpu.memory_space<vmem>>, %arg3: memref<1x128xf32, #tpu.memory_space<vmem>>, %arg4: memref<32x128xbf16, #tpu.memory_space<vmem>>, %arg5: memref<32x128xbf16, #tpu.memory_space<vmem>>, %arg6: memref<1x128xf32, #tpu.memory_space<vmem>>, %arg7: memref<2x8x32xf32, #tpu.memory_space<vmem>>, %arg8: memref<2x8x32xf32, #tpu.memory_space<vmem>>, %arg9: memref<32x128xbf16, #tpu.memory_space<vmem>>, %arg10: memref<1x128xf32, #tpu.memory_space<vmem>>, %arg11: memref<8x128xf32, #tpu.memory_space<vmem>>, %arg12: memref<2x8x32xf32, #tpu.memory_space<vmem>>, %arg13: memref<2x8x32xf32, #tpu.memory_space<vmem>>) attributes {dimension_semantics = [], scalar_prefetch = 0 : i64, scratch_operands = 0 : i64, tpu.core_type = #tpu.core_type<tc>} {
    %c0 = arith.constant 0 : index
    %c0_0 = arith.constant 0 : index
    %0 = vector.load %arg1[%c0, %c0_0] : memref<32x128xbf16, #tpu.memory_space<vmem>>, vector<32x128xbf16>
    %c0_1 = arith.constant 0 : index
    %c0_2 = arith.constant 0 : index
    %1 = vector.load %arg4[%c0_1, %c0_2] : memref<32x128xbf16, #tpu.memory_space<vmem>>, vector<32x128xbf16>
    %c0_3 = arith.constant 0 : index
    %c0_4 = arith.constant 0 : index
    %2 = vector.load %arg2[%c0_3, %c0_4] : memref<32x128xbf16, #tpu.memory_space<vmem>>, vector<32x128xbf16>
    %c0_5 = arith.constant 0 : index
    %c0_6 = arith.constant 0 : index
    %3 = vector.load %arg5[%c0_5, %c0_6] : memref<32x128xbf16, #tpu.memory_space<vmem>>, vector<32x128xbf16>
    %c0_7 = arith.constant 0 : index
    %c0_8 = arith.constant 0 : index
    %4 = vector.load %arg3[%c0_7, %c0_8] : memref<1x128xf32, #tpu.memory_space<vmem>>, vector<1x128xf32>
    %c0_9 = arith.constant 0 : index
    %c0_10 = arith.constant 0 : index
    %5 = vector.load %arg6[%c0_9, %c0_10] : memref<1x128xf32, #tpu.memory_space<vmem>>, vector<1x128xf32>
    %c0_11 = arith.constant 0 : index
    %c0_12 = arith.constant 0 : index
    %6 = vector.load %arg0[%c0_11, %c0_12] : memref<64x32xbf16, #tpu.memory_space<vmem>>, vector<64x32xbf16>
    %cst = arith.constant dense<0.000000e+00> : vector<64x128xf32>
    %7 = tpu.matmul %6, %0, %cst {dimension_numbers = #tpu.dot_dimension_numbers<[1], [0], [0], [1], [0, 0, 1, 1], [], []>} : vector<64x32xbf16>, vector<32x128xbf16>, vector<64x128xf32> -> vector<64x128xf32>
    %8 = vector.broadcast %4 : vector<1x128xf32> to vector<64x128xf32>
    %9 = arith.addf %7, %8 : vector<64x128xf32>
    %c0_13 = arith.constant 0 : index
    %c0_14 = arith.constant 0 : index
    %c0_15 = arith.constant 0 : index
    %10 = vector.load %arg7[%c0_13, %c0_14, %c0_15] : memref<2x8x32xf32, #tpu.memory_space<vmem>>, vector<1x8x32xf32>
    %11 = vector.shape_cast %10 : vector<1x8x32xf32> to vector<8x32xf32>
    %c1 = arith.constant 1 : index
    %c0_16 = arith.constant 0 : index
    %c0_17 = arith.constant 0 : index
    %12 = vector.load %arg7[%c1, %c0_16, %c0_17] : memref<2x8x32xf32, #tpu.memory_space<vmem>>, vector<1x8x32xf32>
    %13 = vector.shape_cast %12 : vector<1x8x32xf32> to vector<8x32xf32>
    %c0_18 = arith.constant 0 : index
    %c0_19 = arith.constant 0 : index
    %c0_20 = arith.constant 0 : index
    %14 = vector.load %arg8[%c0_18, %c0_19, %c0_20] : memref<2x8x32xf32, #tpu.memory_space<vmem>>, vector<1x8x32xf32>
    %15 = vector.shape_cast %14 : vector<1x8x32xf32> to vector<8x32xf32>
    %c1_21 = arith.constant 1 : index
    %c0_22 = arith.constant 0 : index
    %c0_23 = arith.constant 0 : index
    %16 = vector.load %arg8[%c1_21, %c0_22, %c0_23] : memref<2x8x32xf32, #tpu.memory_space<vmem>>, vector<1x8x32xf32>
    %17 = vector.shape_cast %16 : vector<1x8x32xf32> to vector<8x32xf32>
    %18 = arith.truncf %11 : vector<8x32xf32> to vector<8x32xbf16>
    %19 = vector.extract_strided_slice %9 {offsets = [0, 0], sizes = [8, 128], strides = [1, 1]} : vector<64x128xf32> to vector<8x128xf32>
    %cst_24 = arith.constant dense<0.000000e+00> : vector<8x128xf32>
    %20 = tpu.matmul %18, %2, %cst_24 {dimension_numbers = #tpu.dot_dimension_numbers<[1], [0], [0], [1], [0, 0, 1, 1], [], []>} : vector<8x32xbf16>, vector<32x128xbf16>, vector<8x128xf32> -> vector<8x128xf32>
    %21 = arith.addf %19, %20 : vector<8x128xf32>
    %22 = vector.extract_strided_slice %21 {offsets = [0, 0], sizes = [8, 96], strides = [1, 1]} : vector<8x128xf32> to vector<8x96xf32>
    %23 = arith.negf %22 : vector<8x96xf32>
    %24 = math.exp %23 : vector<8x96xf32>
    %cst_25 = arith.constant 1.000000e+00 : f32
    %25 = vector.broadcast %cst_25 : f32 to vector<8x96xf32>
    %26 = arith.addf %25, %24 : vector<8x96xf32>
    %27 = arith.divf %25, %26 : vector<8x96xf32>
    %28 = vector.extract_strided_slice %21 {offsets = [0, 96], sizes = [8, 32], strides = [1, 1]} : vector<8x128xf32> to vector<8x32xf32>
    %29 = math.tanh %28 : vector<8x32xf32>
    %30 = vector.extract_strided_slice %27 {offsets = [0, 0], sizes = [8, 32], strides = [1, 1]} : vector<8x96xf32> to vector<8x32xf32>
    %31 = vector.extract_strided_slice %27 {offsets = [0, 32], sizes = [8, 32], strides = [1, 1]} : vector<8x96xf32> to vector<8x32xf32>
    %32 = vector.extract_strided_slice %27 {offsets = [0, 64], sizes = [8, 32], strides = [1, 1]} : vector<8x96xf32> to vector<8x32xf32>
    %33 = arith.mulf %31, %15 : vector<8x32xf32>
    %34 = arith.mulf %30, %29 : vector<8x32xf32>
    %35 = arith.addf %33, %34 : vector<8x32xf32>
    %36 = math.tanh %35 : vector<8x32xf32>
    %37 = arith.mulf %32, %36 : vector<8x32xf32>
    %38 = arith.truncf %37 : vector<8x32xf32> to vector<8x32xbf16>
    %39 = arith.truncf %13 : vector<8x32xf32> to vector<8x32xbf16>
    %cst_26 = arith.constant dense<0.000000e+00> : vector<8x128xf32>
    %40 = tpu.matmul %38, %1, %cst_26 {dimension_numbers = #tpu.dot_dimension_numbers<[1], [0], [0], [1], [0, 0, 1, 1], [], []>} : vector<8x32xbf16>, vector<32x128xbf16>, vector<8x128xf32> -> vector<8x128xf32>
    %41 = vector.broadcast %5 : vector<1x128xf32> to vector<8x128xf32>
    %42 = arith.addf %40, %41 : vector<8x128xf32>
    %cst_27 = arith.constant dense<0.000000e+00> : vector<8x128xf32>
    %43 = tpu.matmul %39, %3, %cst_27 {dimension_numbers = #tpu.dot_dimension_numbers<[1], [0], [0], [1], [0, 0, 1, 1], [], []>} : vector<8x32xbf16>, vector<32x128xbf16>, vector<8x128xf32> -> vector<8x128xf32>
    %44 = arith.addf %42, %43 : vector<8x128xf32>
    %45 = vector.extract_strided_slice %44 {offsets = [0, 0], sizes = [8, 96], strides = [1, 1]} : vector<8x128xf32> to vector<8x96xf32>
    %46 = arith.negf %45 : vector<8x96xf32>
    %47 = math.exp %46 : vector<8x96xf32>
    %cst_28 = arith.constant 1.000000e+00 : f32
    %48 = vector.broadcast %cst_28 : f32 to vector<8x96xf32>
    %49 = arith.addf %48, %47 : vector<8x96xf32>
    %50 = arith.divf %48, %49 : vector<8x96xf32>
    %51 = vector.extract_strided_slice %44 {offsets = [0, 96], sizes = [8, 32], strides = [1, 1]} : vector<8x128xf32> to vector<8x32xf32>
    %52 = math.tanh %51 : vector<8x32xf32>
    %53 = vector.extract_strided_slice %50 {offsets = [0, 0], sizes = [8, 32], strides = [1, 1]} : vector<8x96xf32> to vector<8x32xf32>
    %54 = vector.extract_strided_slice %50 {offsets = [0, 32], sizes = [8, 32], strides = [1, 1]} : vector<8x96xf32> to vector<8x32xf32>
    %55 = vector.extract_strided_slice %50 {offsets = [0, 64], sizes = [8, 32], strides = [1, 1]} : vector<8x96xf32> to vector<8x32xf32>
    %56 = arith.mulf %54, %17 : vector<8x32xf32>
    %57 = arith.mulf %53, %52 : vector<8x32xf32>
    %58 = arith.addf %56, %57 : vector<8x32xf32>
    %59 = math.tanh %58 : vector<8x32xf32>
    %60 = arith.mulf %55, %59 : vector<8x32xf32>
    %61 = arith.truncf %37 : vector<8x32xf32> to vector<8x32xbf16>
    %62 = vector.extract_strided_slice %9 {offsets = [8, 0], sizes = [8, 128], strides = [1, 1]} : vector<64x128xf32> to vector<8x128xf32>
    %cst_29 = arith.constant dense<0.000000e+00> : vector<8x128xf32>
    %63 = tpu.matmul %61, %2, %cst_29 {dimension_numbers = #tpu.dot_dimension_numbers<[1], [0], [0], [1], [0, 0, 1, 1], [], []>} : vector<8x32xbf16>, vector<32x128xbf16>, vector<8x128xf32> -> vector<8x128xf32>
    %64 = arith.addf %62, %63 : vector<8x128xf32>
    %65 = vector.extract_strided_slice %64 {offsets = [0, 0], sizes = [8, 96], strides = [1, 1]} : vector<8x128xf32> to vector<8x96xf32>
    %66 = arith.negf %65 : vector<8x96xf32>
    %67 = math.exp %66 : vector<8x96xf32>
    %cst_30 = arith.constant 1.000000e+00 : f32
    %68 = vector.broadcast %cst_30 : f32 to vector<8x96xf32>
    %69 = arith.addf %68, %67 : vector<8x96xf32>
    %70 = arith.divf %68, %69 : vector<8x96xf32>
    %71 = vector.extract_strided_slice %64 {offsets = [0, 96], sizes = [8, 32], strides = [1, 1]} : vector<8x128xf32> to vector<8x32xf32>
    %72 = math.tanh %71 : vector<8x32xf32>
    %73 = vector.extract_strided_slice %70 {offsets = [0, 0], sizes = [8, 32], strides = [1, 1]} : vector<8x96xf32> to vector<8x32xf32>
    %74 = vector.extract_strided_slice %70 {offsets = [0, 32], sizes = [8, 32], strides = [1, 1]} : vector<8x96xf32> to vector<8x32xf32>
    %75 = vector.extract_strided_slice %70 {offsets = [0, 64], sizes = [8, 32], strides = [1, 1]} : vector<8x96xf32> to vector<8x32xf32>
    %76 = arith.mulf %74, %35 : vector<8x32xf32>
    %77 = arith.mulf %73, %72 : vector<8x32xf32>
    %78 = arith.addf %76, %77 : vector<8x32xf32>
    %79 = math.tanh %78 : vector<8x32xf32>
    %80 = arith.mulf %75, %79 : vector<8x32xf32>
    %81 = arith.truncf %80 : vector<8x32xf32> to vector<8x32xbf16>
    %82 = arith.truncf %60 : vector<8x32xf32> to vector<8x32xbf16>
    %cst_31 = arith.constant dense<0.000000e+00> : vector<8x128xf32>
    %83 = tpu.matmul %81, %1, %cst_31 {dimension_numbers = #tpu.dot_dimension_numbers<[1], [0], [0], [1], [0, 0, 1, 1], [], []>} : vector<8x32xbf16>, vector<32x128xbf16>, vector<8x128xf32> -> vector<8x128xf32>
    %84 = vector.broadcast %5 : vector<1x128xf32> to vector<8x128xf32>
    %85 = arith.addf %83, %84 : vector<8x128xf32>
    %cst_32 = arith.constant dense<0.000000e+00> : vector<8x128xf32>
    %86 = tpu.matmul %82, %3, %cst_32 {dimension_numbers = #tpu.dot_dimension_numbers<[1], [0], [0], [1], [0, 0, 1, 1], [], []>} : vector<8x32xbf16>, vector<32x128xbf16>, vector<8x128xf32> -> vector<8x128xf32>
    %87 = arith.addf %85, %86 : vector<8x128xf32>
    %88 = vector.extract_strided_slice %87 {offsets = [0, 0], sizes = [8, 96], strides = [1, 1]} : vector<8x128xf32> to vector<8x96xf32>
    %89 = arith.negf %88 : vector<8x96xf32>
    %90 = math.exp %89 : vector<8x96xf32>
    %cst_33 = arith.constant 1.000000e+00 : f32
    %91 = vector.broadcast %cst_33 : f32 to vector<8x96xf32>
    %92 = arith.addf %91, %90 : vector<8x96xf32>
    %93 = arith.divf %91, %92 : vector<8x96xf32>
    %94 = vector.extract_strided_slice %87 {offsets = [0, 96], sizes = [8, 32], strides = [1, 1]} : vector<8x128xf32> to vector<8x32xf32>
    %95 = math.tanh %94 : vector<8x32xf32>
    %96 = vector.extract_strided_slice %93 {offsets = [0, 0], sizes = [8, 32], strides = [1, 1]} : vector<8x96xf32> to vector<8x32xf32>
    %97 = vector.extract_strided_slice %93 {offsets = [0, 32], sizes = [8, 32], strides = [1, 1]} : vector<8x96xf32> to vector<8x32xf32>
    %98 = vector.extract_strided_slice %93 {offsets = [0, 64], sizes = [8, 32], strides = [1, 1]} : vector<8x96xf32> to vector<8x32xf32>
    %99 = arith.mulf %97, %58 : vector<8x32xf32>
    %100 = arith.mulf %96, %95 : vector<8x32xf32>
    %101 = arith.addf %99, %100 : vector<8x32xf32>
    %102 = math.tanh %101 : vector<8x32xf32>
    %103 = arith.mulf %98, %102 : vector<8x32xf32>
    %104 = arith.truncf %80 : vector<8x32xf32> to vector<8x32xbf16>
    %105 = vector.extract_strided_slice %9 {offsets = [16, 0], sizes = [8, 128], strides = [1, 1]} : vector<64x128xf32> to vector<8x128xf32>
    %cst_34 = arith.constant dense<0.000000e+00> : vector<8x128xf32>
    %106 = tpu.matmul %104, %2, %cst_34 {dimension_numbers = #tpu.dot_dimension_numbers<[1], [0], [0], [1], [0, 0, 1, 1], [], []>} : vector<8x32xbf16>, vector<32x128xbf16>, vector<8x128xf32> -> vector<8x128xf32>
    %107 = arith.addf %105, %106 : vector<8x128xf32>
    %108 = vector.extract_strided_slice %107 {offsets = [0, 0], sizes = [8, 96], strides = [1, 1]} : vector<8x128xf32> to vector<8x96xf32>
    %109 = arith.negf %108 : vector<8x96xf32>
    %110 = math.exp %109 : vector<8x96xf32>
    %cst_35 = arith.constant 1.000000e+00 : f32
    %111 = vector.broadcast %cst_35 : f32 to vector<8x96xf32>
    %112 = arith.addf %111, %110 : vector<8x96xf32>
    %113 = arith.divf %111, %112 : vector<8x96xf32>
    %114 = vector.extract_strided_slice %107 {offsets = [0, 96], sizes = [8, 32], strides = [1, 1]} : vector<8x128xf32> to vector<8x32xf32>
    %115 = math.tanh %114 : vector<8x32xf32>
    %116 = vector.extract_strided_slice %113 {offsets = [0, 0], sizes = [8, 32], strides = [1, 1]} : vector<8x96xf32> to vector<8x32xf32>
    %117 = vector.extract_strided_slice %113 {offsets = [0, 32], sizes = [8, 32], strides = [1, 1]} : vector<8x96xf32> to vector<8x32xf32>
    %118 = vector.extract_strided_slice %113 {offsets = [0, 64], sizes = [8, 32], strides = [1, 1]} : vector<8x96xf32> to vector<8x32xf32>
    %119 = arith.mulf %117, %78 : vector<8x32xf32>
    %120 = arith.mulf %116, %115 : vector<8x32xf32>
    %121 = arith.addf %119, %120 : vector<8x32xf32>
    %122 = math.tanh %121 : vector<8x32xf32>
    %123 = arith.mulf %118, %122 : vector<8x32xf32>
    %124 = arith.truncf %123 : vector<8x32xf32> to vector<8x32xbf16>
    %125 = arith.truncf %103 : vector<8x32xf32> to vector<8x32xbf16>
    %cst_36 = arith.constant dense<0.000000e+00> : vector<8x128xf32>
    %126 = tpu.matmul %124, %1, %cst_36 {dimension_numbers = #tpu.dot_dimension_numbers<[1], [0], [0], [1], [0, 0, 1, 1], [], []>} : vector<8x32xbf16>, vector<32x128xbf16>, vector<8x128xf32> -> vector<8x128xf32>
    %127 = vector.broadcast %5 : vector<1x128xf32> to vector<8x128xf32>
    %128 = arith.addf %126, %127 : vector<8x128xf32>
    %cst_37 = arith.constant dense<0.000000e+00> : vector<8x128xf32>
    %129 = tpu.matmul %125, %3, %cst_37 {dimension_numbers = #tpu.dot_dimension_numbers<[1], [0], [0], [1], [0, 0, 1, 1], [], []>} : vector<8x32xbf16>, vector<32x128xbf16>, vector<8x128xf32> -> vector<8x128xf32>
    %130 = arith.addf %128, %129 : vector<8x128xf32>
    %131 = vector.extract_strided_slice %130 {offsets = [0, 0], sizes = [8, 96], strides = [1, 1]} : vector<8x128xf32> to vector<8x96xf32>
    %132 = arith.negf %131 : vector<8x96xf32>
    %133 = math.exp %132 : vector<8x96xf32>
    %cst_38 = arith.constant 1.000000e+00 : f32
    %134 = vector.broadcast %cst_38 : f32 to vector<8x96xf32>
    %135 = arith.addf %134, %133 : vector<8x96xf32>
    %136 = arith.divf %134, %135 : vector<8x96xf32>
    %137 = vector.extract_strided_slice %130 {offsets = [0, 96], sizes = [8, 32], strides = [1, 1]} : vector<8x128xf32> to vector<8x32xf32>
    %138 = math.tanh %137 : vector<8x32xf32>
    %139 = vector.extract_strided_slice %136 {offsets = [0, 0], sizes = [8, 32], strides = [1, 1]} : vector<8x96xf32> to vector<8x32xf32>
    %140 = vector.extract_strided_slice %136 {offsets = [0, 32], sizes = [8, 32], strides = [1, 1]} : vector<8x96xf32> to vector<8x32xf32>
    %141 = vector.extract_strided_slice %136 {offsets = [0, 64], sizes = [8, 32], strides = [1, 1]} : vector<8x96xf32> to vector<8x32xf32>
    %142 = arith.mulf %140, %101 : vector<8x32xf32>
    %143 = arith.mulf %139, %138 : vector<8x32xf32>
    %144 = arith.addf %142, %143 : vector<8x32xf32>
    %145 = math.tanh %144 : vector<8x32xf32>
    %146 = arith.mulf %141, %145 : vector<8x32xf32>
    %147 = arith.truncf %123 : vector<8x32xf32> to vector<8x32xbf16>
    %148 = vector.extract_strided_slice %9 {offsets = [24, 0], sizes = [8, 128], strides = [1, 1]} : vector<64x128xf32> to vector<8x128xf32>
    %cst_39 = arith.constant dense<0.000000e+00> : vector<8x128xf32>
    %149 = tpu.matmul %147, %2, %cst_39 {dimension_numbers = #tpu.dot_dimension_numbers<[1], [0], [0], [1], [0, 0, 1, 1], [], []>} : vector<8x32xbf16>, vector<32x128xbf16>, vector<8x128xf32> -> vector<8x128xf32>
    %150 = arith.addf %148, %149 : vector<8x128xf32>
    %151 = vector.extract_strided_slice %150 {offsets = [0, 0], sizes = [8, 96], strides = [1, 1]} : vector<8x128xf32> to vector<8x96xf32>
    %152 = arith.negf %151 : vector<8x96xf32>
    %153 = math.exp %152 : vector<8x96xf32>
    %cst_40 = arith.constant 1.000000e+00 : f32
    %154 = vector.broadcast %cst_40 : f32 to vector<8x96xf32>
    %155 = arith.addf %154, %153 : vector<8x96xf32>
    %156 = arith.divf %154, %155 : vector<8x96xf32>
    %157 = vector.extract_strided_slice %150 {offsets = [0, 96], sizes = [8, 32], strides = [1, 1]} : vector<8x128xf32> to vector<8x32xf32>
    %158 = math.tanh %157 : vector<8x32xf32>
    %159 = vector.extract_strided_slice %156 {offsets = [0, 0], sizes = [8, 32], strides = [1, 1]} : vector<8x96xf32> to vector<8x32xf32>
    %160 = vector.extract_strided_slice %156 {offsets = [0, 32], sizes = [8, 32], strides = [1, 1]} : vector<8x96xf32> to vector<8x32xf32>
    %161 = vector.extract_strided_slice %156 {offsets = [0, 64], sizes = [8, 32], strides = [1, 1]} : vector<8x96xf32> to vector<8x32xf32>
    %162 = arith.mulf %160, %121 : vector<8x32xf32>
    %163 = arith.mulf %159, %158 : vector<8x32xf32>
    %164 = arith.addf %162, %163 : vector<8x32xf32>
    %165 = math.tanh %164 : vector<8x32xf32>
    %166 = arith.mulf %161, %165 : vector<8x32xf32>
    %167 = arith.truncf %166 : vector<8x32xf32> to vector<8x32xbf16>
    %168 = arith.truncf %146 : vector<8x32xf32> to vector<8x32xbf16>
    %cst_41 = arith.constant dense<0.000000e+00> : vector<8x128xf32>
    %169 = tpu.matmul %167, %1, %cst_41 {dimension_numbers = #tpu.dot_dimension_numbers<[1], [0], [0], [1], [0, 0, 1, 1], [], []>} : vector<8x32xbf16>, vector<32x128xbf16>, vector<8x128xf32> -> vector<8x128xf32>
    %170 = vector.broadcast %5 : vector<1x128xf32> to vector<8x128xf32>
    %171 = arith.addf %169, %170 : vector<8x128xf32>
    %cst_42 = arith.constant dense<0.000000e+00> : vector<8x128xf32>
    %172 = tpu.matmul %168, %3, %cst_42 {dimension_numbers = #tpu.dot_dimension_numbers<[1], [0], [0], [1], [0, 0, 1, 1], [], []>} : vector<8x32xbf16>, vector<32x128xbf16>, vector<8x128xf32> -> vector<8x128xf32>
    %173 = arith.addf %171, %172 : vector<8x128xf32>
    %174 = vector.extract_strided_slice %173 {offsets = [0, 0], sizes = [8, 96], strides = [1, 1]} : vector<8x128xf32> to vector<8x96xf32>
    %175 = arith.negf %174 : vector<8x96xf32>
    %176 = math.exp %175 : vector<8x96xf32>
    %cst_43 = arith.constant 1.000000e+00 : f32
    %177 = vector.broadcast %cst_43 : f32 to vector<8x96xf32>
    %178 = arith.addf %177, %176 : vector<8x96xf32>
    %179 = arith.divf %177, %178 : vector<8x96xf32>
    %180 = vector.extract_strided_slice %173 {offsets = [0, 96], sizes = [8, 32], strides = [1, 1]} : vector<8x128xf32> to vector<8x32xf32>
    %181 = math.tanh %180 : vector<8x32xf32>
    %182 = vector.extract_strided_slice %179 {offsets = [0, 0], sizes = [8, 32], strides = [1, 1]} : vector<8x96xf32> to vector<8x32xf32>
    %183 = vector.extract_strided_slice %179 {offsets = [0, 32], sizes = [8, 32], strides = [1, 1]} : vector<8x96xf32> to vector<8x32xf32>
    %184 = vector.extract_strided_slice %179 {offsets = [0, 64], sizes = [8, 32], strides = [1, 1]} : vector<8x96xf32> to vector<8x32xf32>
    %185 = arith.mulf %183, %144 : vector<8x32xf32>
    %186 = arith.mulf %182, %181 : vector<8x32xf32>
    %187 = arith.addf %185, %186 : vector<8x32xf32>
    %188 = math.tanh %187 : vector<8x32xf32>
    %189 = arith.mulf %184, %188 : vector<8x32xf32>
    %190 = arith.truncf %166 : vector<8x32xf32> to vector<8x32xbf16>
    %191 = vector.extract_strided_slice %9 {offsets = [32, 0], sizes = [8, 128], strides = [1, 1]} : vector<64x128xf32> to vector<8x128xf32>
    %cst_44 = arith.constant dense<0.000000e+00> : vector<8x128xf32>
    %192 = tpu.matmul %190, %2, %cst_44 {dimension_numbers = #tpu.dot_dimension_numbers<[1], [0], [0], [1], [0, 0, 1, 1], [], []>} : vector<8x32xbf16>, vector<32x128xbf16>, vector<8x128xf32> -> vector<8x128xf32>
    %193 = arith.addf %191, %192 : vector<8x128xf32>
    %194 = vector.extract_strided_slice %193 {offsets = [0, 0], sizes = [8, 96], strides = [1, 1]} : vector<8x128xf32> to vector<8x96xf32>
    %195 = arith.negf %194 : vector<8x96xf32>
    %196 = math.exp %195 : vector<8x96xf32>
    %cst_45 = arith.constant 1.000000e+00 : f32
    %197 = vector.broadcast %cst_45 : f32 to vector<8x96xf32>
    %198 = arith.addf %197, %196 : vector<8x96xf32>
    %199 = arith.divf %197, %198 : vector<8x96xf32>
    %200 = vector.extract_strided_slice %193 {offsets = [0, 96], sizes = [8, 32], strides = [1, 1]} : vector<8x128xf32> to vector<8x32xf32>
    %201 = math.tanh %200 : vector<8x32xf32>
    %202 = vector.extract_strided_slice %199 {offsets = [0, 0], sizes = [8, 32], strides = [1, 1]} : vector<8x96xf32> to vector<8x32xf32>
    %203 = vector.extract_strided_slice %199 {offsets = [0, 32], sizes = [8, 32], strides = [1, 1]} : vector<8x96xf32> to vector<8x32xf32>
    %204 = vector.extract_strided_slice %199 {offsets = [0, 64], sizes = [8, 32], strides = [1, 1]} : vector<8x96xf32> to vector<8x32xf32>
    %205 = arith.mulf %203, %164 : vector<8x32xf32>
    %206 = arith.mulf %202, %201 : vector<8x32xf32>
    %207 = arith.addf %205, %206 : vector<8x32xf32>
    %208 = math.tanh %207 : vector<8x32xf32>
    %209 = arith.mulf %204, %208 : vector<8x32xf32>
    %210 = arith.truncf %209 : vector<8x32xf32> to vector<8x32xbf16>
    %211 = arith.truncf %189 : vector<8x32xf32> to vector<8x32xbf16>
    %cst_46 = arith.constant dense<0.000000e+00> : vector<8x128xf32>
    %212 = tpu.matmul %210, %1, %cst_46 {dimension_numbers = #tpu.dot_dimension_numbers<[1], [0], [0], [1], [0, 0, 1, 1], [], []>} : vector<8x32xbf16>, vector<32x128xbf16>, vector<8x128xf32> -> vector<8x128xf32>
    %213 = vector.broadcast %5 : vector<1x128xf32> to vector<8x128xf32>
    %214 = arith.addf %212, %213 : vector<8x128xf32>
    %cst_47 = arith.constant dense<0.000000e+00> : vector<8x128xf32>
    %215 = tpu.matmul %211, %3, %cst_47 {dimension_numbers = #tpu.dot_dimension_numbers<[1], [0], [0], [1], [0, 0, 1, 1], [], []>} : vector<8x32xbf16>, vector<32x128xbf16>, vector<8x128xf32> -> vector<8x128xf32>
    %216 = arith.addf %214, %215 : vector<8x128xf32>
    %217 = vector.extract_strided_slice %216 {offsets = [0, 0], sizes = [8, 96], strides = [1, 1]} : vector<8x128xf32> to vector<8x96xf32>
    %218 = arith.negf %217 : vector<8x96xf32>
    %219 = math.exp %218 : vector<8x96xf32>
    %cst_48 = arith.constant 1.000000e+00 : f32
    %220 = vector.broadcast %cst_48 : f32 to vector<8x96xf32>
    %221 = arith.addf %220, %219 : vector<8x96xf32>
    %222 = arith.divf %220, %221 : vector<8x96xf32>
    %223 = vector.extract_strided_slice %216 {offsets = [0, 96], sizes = [8, 32], strides = [1, 1]} : vector<8x128xf32> to vector<8x32xf32>
    %224 = math.tanh %223 : vector<8x32xf32>
    %225 = vector.extract_strided_slice %222 {offsets = [0, 0], sizes = [8, 32], strides = [1, 1]} : vector<8x96xf32> to vector<8x32xf32>
    %226 = vector.extract_strided_slice %222 {offsets = [0, 32], sizes = [8, 32], strides = [1, 1]} : vector<8x96xf32> to vector<8x32xf32>
    %227 = vector.extract_strided_slice %222 {offsets = [0, 64], sizes = [8, 32], strides = [1, 1]} : vector<8x96xf32> to vector<8x32xf32>
    %228 = arith.mulf %226, %187 : vector<8x32xf32>
    %229 = arith.mulf %225, %224 : vector<8x32xf32>
    %230 = arith.addf %228, %229 : vector<8x32xf32>
    %231 = math.tanh %230 : vector<8x32xf32>
    %232 = arith.mulf %227, %231 : vector<8x32xf32>
    %233 = arith.truncf %209 : vector<8x32xf32> to vector<8x32xbf16>
    %234 = vector.extract_strided_slice %9 {offsets = [40, 0], sizes = [8, 128], strides = [1, 1]} : vector<64x128xf32> to vector<8x128xf32>
    %cst_49 = arith.constant dense<0.000000e+00> : vector<8x128xf32>
    %235 = tpu.matmul %233, %2, %cst_49 {dimension_numbers = #tpu.dot_dimension_numbers<[1], [0], [0], [1], [0, 0, 1, 1], [], []>} : vector<8x32xbf16>, vector<32x128xbf16>, vector<8x128xf32> -> vector<8x128xf32>
    %236 = arith.addf %234, %235 : vector<8x128xf32>
    %237 = vector.extract_strided_slice %236 {offsets = [0, 0], sizes = [8, 96], strides = [1, 1]} : vector<8x128xf32> to vector<8x96xf32>
    %238 = arith.negf %237 : vector<8x96xf32>
    %239 = math.exp %238 : vector<8x96xf32>
    %cst_50 = arith.constant 1.000000e+00 : f32
    %240 = vector.broadcast %cst_50 : f32 to vector<8x96xf32>
    %241 = arith.addf %240, %239 : vector<8x96xf32>
    %242 = arith.divf %240, %241 : vector<8x96xf32>
    %243 = vector.extract_strided_slice %236 {offsets = [0, 96], sizes = [8, 32], strides = [1, 1]} : vector<8x128xf32> to vector<8x32xf32>
    %244 = math.tanh %243 : vector<8x32xf32>
    %245 = vector.extract_strided_slice %242 {offsets = [0, 0], sizes = [8, 32], strides = [1, 1]} : vector<8x96xf32> to vector<8x32xf32>
    %246 = vector.extract_strided_slice %242 {offsets = [0, 32], sizes = [8, 32], strides = [1, 1]} : vector<8x96xf32> to vector<8x32xf32>
    %247 = vector.extract_strided_slice %242 {offsets = [0, 64], sizes = [8, 32], strides = [1, 1]} : vector<8x96xf32> to vector<8x32xf32>
    %248 = arith.mulf %246, %207 : vector<8x32xf32>
    %249 = arith.mulf %245, %244 : vector<8x32xf32>
    %250 = arith.addf %248, %249 : vector<8x32xf32>
    %251 = math.tanh %250 : vector<8x32xf32>
    %252 = arith.mulf %247, %251 : vector<8x32xf32>
    %253 = arith.truncf %252 : vector<8x32xf32> to vector<8x32xbf16>
    %254 = arith.truncf %232 : vector<8x32xf32> to vector<8x32xbf16>
    %cst_51 = arith.constant dense<0.000000e+00> : vector<8x128xf32>
    %255 = tpu.matmul %253, %1, %cst_51 {dimension_numbers = #tpu.dot_dimension_numbers<[1], [0], [0], [1], [0, 0, 1, 1], [], []>} : vector<8x32xbf16>, vector<32x128xbf16>, vector<8x128xf32> -> vector<8x128xf32>
    %256 = vector.broadcast %5 : vector<1x128xf32> to vector<8x128xf32>
    %257 = arith.addf %255, %256 : vector<8x128xf32>
    %cst_52 = arith.constant dense<0.000000e+00> : vector<8x128xf32>
    %258 = tpu.matmul %254, %3, %cst_52 {dimension_numbers = #tpu.dot_dimension_numbers<[1], [0], [0], [1], [0, 0, 1, 1], [], []>} : vector<8x32xbf16>, vector<32x128xbf16>, vector<8x128xf32> -> vector<8x128xf32>
    %259 = arith.addf %257, %258 : vector<8x128xf32>
    %260 = vector.extract_strided_slice %259 {offsets = [0, 0], sizes = [8, 96], strides = [1, 1]} : vector<8x128xf32> to vector<8x96xf32>
    %261 = arith.negf %260 : vector<8x96xf32>
    %262 = math.exp %261 : vector<8x96xf32>
    %cst_53 = arith.constant 1.000000e+00 : f32
    %263 = vector.broadcast %cst_53 : f32 to vector<8x96xf32>
    %264 = arith.addf %263, %262 : vector<8x96xf32>
    %265 = arith.divf %263, %264 : vector<8x96xf32>
    %266 = vector.extract_strided_slice %259 {offsets = [0, 96], sizes = [8, 32], strides = [1, 1]} : vector<8x128xf32> to vector<8x32xf32>
    %267 = math.tanh %266 : vector<8x32xf32>
    %268 = vector.extract_strided_slice %265 {offsets = [0, 0], sizes = [8, 32], strides = [1, 1]} : vector<8x96xf32> to vector<8x32xf32>
    %269 = vector.extract_strided_slice %265 {offsets = [0, 32], sizes = [8, 32], strides = [1, 1]} : vector<8x96xf32> to vector<8x32xf32>
    %270 = vector.extract_strided_slice %265 {offsets = [0, 64], sizes = [8, 32], strides = [1, 1]} : vector<8x96xf32> to vector<8x32xf32>
    %271 = arith.mulf %269, %230 : vector<8x32xf32>
    %272 = arith.mulf %268, %267 : vector<8x32xf32>
    %273 = arith.addf %271, %272 : vector<8x32xf32>
    %274 = math.tanh %273 : vector<8x32xf32>
    %275 = arith.mulf %270, %274 : vector<8x32xf32>
    %276 = arith.truncf %252 : vector<8x32xf32> to vector<8x32xbf16>
    %277 = vector.extract_strided_slice %9 {offsets = [48, 0], sizes = [8, 128], strides = [1, 1]} : vector<64x128xf32> to vector<8x128xf32>
    %cst_54 = arith.constant dense<0.000000e+00> : vector<8x128xf32>
    %278 = tpu.matmul %276, %2, %cst_54 {dimension_numbers = #tpu.dot_dimension_numbers<[1], [0], [0], [1], [0, 0, 1, 1], [], []>} : vector<8x32xbf16>, vector<32x128xbf16>, vector<8x128xf32> -> vector<8x128xf32>
    %279 = arith.addf %277, %278 : vector<8x128xf32>
    %280 = vector.extract_strided_slice %279 {offsets = [0, 0], sizes = [8, 96], strides = [1, 1]} : vector<8x128xf32> to vector<8x96xf32>
    %281 = arith.negf %280 : vector<8x96xf32>
    %282 = math.exp %281 : vector<8x96xf32>
    %cst_55 = arith.constant 1.000000e+00 : f32
    %283 = vector.broadcast %cst_55 : f32 to vector<8x96xf32>
    %284 = arith.addf %283, %282 : vector<8x96xf32>
    %285 = arith.divf %283, %284 : vector<8x96xf32>
    %286 = vector.extract_strided_slice %279 {offsets = [0, 96], sizes = [8, 32], strides = [1, 1]} : vector<8x128xf32> to vector<8x32xf32>
    %287 = math.tanh %286 : vector<8x32xf32>
    %288 = vector.extract_strided_slice %285 {offsets = [0, 0], sizes = [8, 32], strides = [1, 1]} : vector<8x96xf32> to vector<8x32xf32>
    %289 = vector.extract_strided_slice %285 {offsets = [0, 32], sizes = [8, 32], strides = [1, 1]} : vector<8x96xf32> to vector<8x32xf32>
    %290 = vector.extract_strided_slice %285 {offsets = [0, 64], sizes = [8, 32], strides = [1, 1]} : vector<8x96xf32> to vector<8x32xf32>
    %291 = arith.mulf %289, %250 : vector<8x32xf32>
    %292 = arith.mulf %288, %287 : vector<8x32xf32>
    %293 = arith.addf %291, %292 : vector<8x32xf32>
    %294 = math.tanh %293 : vector<8x32xf32>
    %295 = arith.mulf %290, %294 : vector<8x32xf32>
    %296 = arith.truncf %295 : vector<8x32xf32> to vector<8x32xbf16>
    %297 = arith.truncf %275 : vector<8x32xf32> to vector<8x32xbf16>
    %cst_56 = arith.constant dense<0.000000e+00> : vector<8x128xf32>
    %298 = tpu.matmul %296, %1, %cst_56 {dimension_numbers = #tpu.dot_dimension_numbers<[1], [0], [0], [1], [0, 0, 1, 1], [], []>} : vector<8x32xbf16>, vector<32x128xbf16>, vector<8x128xf32> -> vector<8x128xf32>
    %299 = vector.broadcast %5 : vector<1x128xf32> to vector<8x128xf32>
    %300 = arith.addf %298, %299 : vector<8x128xf32>
    %cst_57 = arith.constant dense<0.000000e+00> : vector<8x128xf32>
    %301 = tpu.matmul %297, %3, %cst_57 {dimension_numbers = #tpu.dot_dimension_numbers<[1], [0], [0], [1], [0, 0, 1, 1], [], []>} : vector<8x32xbf16>, vector<32x128xbf16>, vector<8x128xf32> -> vector<8x128xf32>
    %302 = arith.addf %300, %301 : vector<8x128xf32>
    %303 = vector.extract_strided_slice %302 {offsets = [0, 0], sizes = [8, 96], strides = [1, 1]} : vector<8x128xf32> to vector<8x96xf32>
    %304 = arith.negf %303 : vector<8x96xf32>
    %305 = math.exp %304 : vector<8x96xf32>
    %cst_58 = arith.constant 1.000000e+00 : f32
    %306 = vector.broadcast %cst_58 : f32 to vector<8x96xf32>
    %307 = arith.addf %306, %305 : vector<8x96xf32>
    %308 = arith.divf %306, %307 : vector<8x96xf32>
    %309 = vector.extract_strided_slice %302 {offsets = [0, 96], sizes = [8, 32], strides = [1, 1]} : vector<8x128xf32> to vector<8x32xf32>
    %310 = math.tanh %309 : vector<8x32xf32>
    %311 = vector.extract_strided_slice %308 {offsets = [0, 0], sizes = [8, 32], strides = [1, 1]} : vector<8x96xf32> to vector<8x32xf32>
    %312 = vector.extract_strided_slice %308 {offsets = [0, 32], sizes = [8, 32], strides = [1, 1]} : vector<8x96xf32> to vector<8x32xf32>
    %313 = vector.extract_strided_slice %308 {offsets = [0, 64], sizes = [8, 32], strides = [1, 1]} : vector<8x96xf32> to vector<8x32xf32>
    %314 = arith.mulf %312, %273 : vector<8x32xf32>
    %315 = arith.mulf %311, %310 : vector<8x32xf32>
    %316 = arith.addf %314, %315 : vector<8x32xf32>
    %317 = math.tanh %316 : vector<8x32xf32>
    %318 = arith.mulf %313, %317 : vector<8x32xf32>
    %319 = arith.truncf %295 : vector<8x32xf32> to vector<8x32xbf16>
    %320 = vector.extract_strided_slice %9 {offsets = [56, 0], sizes = [8, 128], strides = [1, 1]} : vector<64x128xf32> to vector<8x128xf32>
    %cst_59 = arith.constant dense<0.000000e+00> : vector<8x128xf32>
    %321 = tpu.matmul %319, %2, %cst_59 {dimension_numbers = #tpu.dot_dimension_numbers<[1], [0], [0], [1], [0, 0, 1, 1], [], []>} : vector<8x32xbf16>, vector<32x128xbf16>, vector<8x128xf32> -> vector<8x128xf32>
    %322 = arith.addf %320, %321 : vector<8x128xf32>
    %323 = vector.extract_strided_slice %322 {offsets = [0, 0], sizes = [8, 96], strides = [1, 1]} : vector<8x128xf32> to vector<8x96xf32>
    %324 = arith.negf %323 : vector<8x96xf32>
    %325 = math.exp %324 : vector<8x96xf32>
    %cst_60 = arith.constant 1.000000e+00 : f32
    %326 = vector.broadcast %cst_60 : f32 to vector<8x96xf32>
    %327 = arith.addf %326, %325 : vector<8x96xf32>
    %328 = arith.divf %326, %327 : vector<8x96xf32>
    %329 = vector.extract_strided_slice %322 {offsets = [0, 96], sizes = [8, 32], strides = [1, 1]} : vector<8x128xf32> to vector<8x32xf32>
    %330 = math.tanh %329 : vector<8x32xf32>
    %331 = vector.extract_strided_slice %328 {offsets = [0, 0], sizes = [8, 32], strides = [1, 1]} : vector<8x96xf32> to vector<8x32xf32>
    %332 = vector.extract_strided_slice %328 {offsets = [0, 32], sizes = [8, 32], strides = [1, 1]} : vector<8x96xf32> to vector<8x32xf32>
    %333 = vector.extract_strided_slice %328 {offsets = [0, 64], sizes = [8, 32], strides = [1, 1]} : vector<8x96xf32> to vector<8x32xf32>
    %334 = arith.mulf %332, %293 : vector<8x32xf32>
    %335 = arith.mulf %331, %330 : vector<8x32xf32>
    %336 = arith.addf %334, %335 : vector<8x32xf32>
    %337 = math.tanh %336 : vector<8x32xf32>
    %338 = arith.mulf %333, %337 : vector<8x32xf32>
    %339 = arith.truncf %338 : vector<8x32xf32> to vector<8x32xbf16>
    %340 = arith.truncf %318 : vector<8x32xf32> to vector<8x32xbf16>
    %cst_61 = arith.constant dense<0.000000e+00> : vector<8x128xf32>
    %341 = tpu.matmul %339, %1, %cst_61 {dimension_numbers = #tpu.dot_dimension_numbers<[1], [0], [0], [1], [0, 0, 1, 1], [], []>} : vector<8x32xbf16>, vector<32x128xbf16>, vector<8x128xf32> -> vector<8x128xf32>
    %342 = vector.broadcast %5 : vector<1x128xf32> to vector<8x128xf32>
    %343 = arith.addf %341, %342 : vector<8x128xf32>
    %cst_62 = arith.constant dense<0.000000e+00> : vector<8x128xf32>
    %344 = tpu.matmul %340, %3, %cst_62 {dimension_numbers = #tpu.dot_dimension_numbers<[1], [0], [0], [1], [0, 0, 1, 1], [], []>} : vector<8x32xbf16>, vector<32x128xbf16>, vector<8x128xf32> -> vector<8x128xf32>
    %345 = arith.addf %343, %344 : vector<8x128xf32>
    %346 = vector.extract_strided_slice %345 {offsets = [0, 0], sizes = [8, 96], strides = [1, 1]} : vector<8x128xf32> to vector<8x96xf32>
    %347 = arith.negf %346 : vector<8x96xf32>
    %348 = math.exp %347 : vector<8x96xf32>
    %cst_63 = arith.constant 1.000000e+00 : f32
    %349 = vector.broadcast %cst_63 : f32 to vector<8x96xf32>
    %350 = arith.addf %349, %348 : vector<8x96xf32>
    %351 = arith.divf %349, %350 : vector<8x96xf32>
    %352 = vector.extract_strided_slice %345 {offsets = [0, 96], sizes = [8, 32], strides = [1, 1]} : vector<8x128xf32> to vector<8x32xf32>
    %353 = math.tanh %352 : vector<8x32xf32>
    %354 = vector.extract_strided_slice %351 {offsets = [0, 0], sizes = [8, 32], strides = [1, 1]} : vector<8x96xf32> to vector<8x32xf32>
    %355 = vector.extract_strided_slice %351 {offsets = [0, 32], sizes = [8, 32], strides = [1, 1]} : vector<8x96xf32> to vector<8x32xf32>
    %356 = vector.extract_strided_slice %351 {offsets = [0, 64], sizes = [8, 32], strides = [1, 1]} : vector<8x96xf32> to vector<8x32xf32>
    %357 = arith.mulf %355, %316 : vector<8x32xf32>
    %358 = arith.mulf %354, %353 : vector<8x32xf32>
    %359 = arith.addf %357, %358 : vector<8x32xf32>
    %360 = math.tanh %359 : vector<8x32xf32>
    %361 = arith.mulf %356, %360 : vector<8x32xf32>
    %c0_64 = arith.constant 0 : index
    %c0_65 = arith.constant 0 : index
    %c0_66 = arith.constant 0 : index
    %362 = vector.load %arg12[%c0_64, %c0_65, %c0_66] : memref<2x8x32xf32, #tpu.memory_space<vmem>>, vector<1x8x32xf32>
    %363 = vector.shape_cast %362 : vector<1x8x32xf32> to vector<8x32xf32>
    %364 = vector.shape_cast %338 : vector<8x32xf32> to vector<1x8x32xf32>
    tpu.vector_store %arg12[%c0_64, %c0_65, %c0_66], %364 {strides = array<i32>} : memref<2x8x32xf32, #tpu.memory_space<vmem>>, vector<1x8x32xf32>,
    %c0_67 = arith.constant 0 : index
    %c0_68 = arith.constant 0 : index
    %c0_69 = arith.constant 0 : index
    %365 = vector.load %arg13[%c0_67, %c0_68, %c0_69] : memref<2x8x32xf32, #tpu.memory_space<vmem>>, vector<1x8x32xf32>
    %366 = vector.shape_cast %365 : vector<1x8x32xf32> to vector<8x32xf32>
    %367 = vector.shape_cast %336 : vector<8x32xf32> to vector<1x8x32xf32>
    tpu.vector_store %arg13[%c0_67, %c0_68, %c0_69], %367 {strides = array<i32>} : memref<2x8x32xf32, #tpu.memory_space<vmem>>, vector<1x8x32xf32>,
    %c1_70 = arith.constant 1 : index
    %c0_71 = arith.constant 0 : index
    %c0_72 = arith.constant 0 : index
    %368 = vector.load %arg12[%c1_70, %c0_71, %c0_72] : memref<2x8x32xf32, #tpu.memory_space<vmem>>, vector<1x8x32xf32>
    %369 = vector.shape_cast %368 : vector<1x8x32xf32> to vector<8x32xf32>
    %370 = vector.shape_cast %361 : vector<8x32xf32> to vector<1x8x32xf32>
    tpu.vector_store %arg12[%c1_70, %c0_71, %c0_72], %370 {strides = array<i32>} : memref<2x8x32xf32, #tpu.memory_space<vmem>>, vector<1x8x32xf32>,
    %c1_73 = arith.constant 1 : index
    %c0_74 = arith.constant 0 : index
    %c0_75 = arith.constant 0 : index
    %371 = vector.load %arg13[%c1_73, %c0_74, %c0_75] : memref<2x8x32xf32, #tpu.memory_space<vmem>>, vector<1x8x32xf32>
    %372 = vector.shape_cast %371 : vector<1x8x32xf32> to vector<8x32xf32>
    %373 = vector.shape_cast %359 : vector<8x32xf32> to vector<1x8x32xf32>
    tpu.vector_store %arg13[%c1_73, %c0_74, %c0_75], %373 {strides = array<i32>} : memref<2x8x32xf32, #tpu.memory_space<vmem>>, vector<1x8x32xf32>,
    %374 = arith.truncf %361 : vector<8x32xf32> to vector<8x32xbf16>
    %c0_76 = arith.constant 0 : index
    %c0_77 = arith.constant 0 : index
    %375 = vector.load %arg9[%c0_76, %c0_77] : memref<32x128xbf16, #tpu.memory_space<vmem>>, vector<32x128xbf16>
    %cst_78 = arith.constant dense<0.000000e+00> : vector<8x128xf32>
    %376 = tpu.matmul %374, %375, %cst_78 {dimension_numbers = #tpu.dot_dimension_numbers<[1], [0], [0], [1], [0, 0, 1, 1], [], []>} : vector<8x32xbf16>, vector<32x128xbf16>, vector<8x128xf32> -> vector<8x128xf32>
    %c0_79 = arith.constant 0 : index
    %c0_80 = arith.constant 0 : index
    %377 = vector.load %arg10[%c0_79, %c0_80] : memref<1x128xf32, #tpu.memory_space<vmem>>, vector<1x128xf32>
    %378 = vector.broadcast %377 : vector<1x128xf32> to vector<8x128xf32>
    %379 = arith.addf %376, %378 : vector<8x128xf32>
    %cst_81 = arith.constant dense<0xFF800000> : vector<8xf32>
    %380 = vector.multi_reduction <maximumf>, %379, %cst_81 [1] : vector<8x128xf32> to vector<8xf32>
    %381 = vector.shape_cast %380 : vector<8xf32> to vector<8x1xf32>
    %382 = vector.broadcast %381 : vector<8x1xf32> to vector<8x128xf32>
    %383 = arith.subf %379, %382 : vector<8x128xf32>
    %384 = math.exp %383 : vector<8x128xf32>
    %cst_82 = arith.constant dense<0.000000e+00> : vector<8xf32>
    %385 = vector.multi_reduction <add>, %384, %cst_82 [1] : vector<8x128xf32> to vector<8xf32>
    %386 = vector.shape_cast %385 : vector<8xf32> to vector<8x1xf32>
    %387 = math.log %386 : vector<8x1xf32>
    %388 = arith.addf %387, %381 : vector<8x1xf32>
    %389 = vector.broadcast %388 : vector<8x1xf32> to vector<8x128xf32>
    %390 = arith.subf %379, %389 : vector<8x128xf32>
    %c0_83 = arith.constant 0 : index
    %c0_84 = arith.constant 0 : index
    %391 = vector.load %arg11[%c0_83, %c0_84] : memref<8x128xf32, #tpu.memory_space<vmem>>, vector<8x128xf32>
    tpu.vector_store %arg11[%c0_83, %c0_84], %390 {strides = array<i32>} : memref<8x128xf32, #tpu.memory_space<vmem>>, vector<8x128xf32>,
    return
  }
}

</mosaic_0001>

<bundles_post_ra>
// kernel: forward.1
= control target key start
LH: loop header
LB: loop body
LE: loop exit
PB: predicated region body
PF: predicated region fallthrough
CT: control target
= control target key end

     0   :  { %v2382_v1 = vmov 0.0   ;;  %vm2383_vm0 = vmmov 0   ;;  %vm106_vm1 = vcmask 261120   ;;  %s2384_s22 = smov 32   ;;  %s2386_s29 = smov 96   ;;  %s2900_s1 = inlined_call_operand.vmem [shape: bf16[32,128], index: 1, kind: input, shape index: {}]   ;;  %s2901_s2 = inlined_call_operand.vmem [shape: bf16[32,128], index: 2, kind: input, shape index: {}]   ;;  %s2902_s0 = inlined_call_operand.vmem [shape: bf16[64,32], index: 0, kind: input, shape index: {}]   ;;  %s2903_s7 = inlined_call_operand.vmem [shape: f32[2,8,32], index: 7, kind: input, shape index: {}]   ;;  %s2904_s3 = inlined_call_operand.vmem [shape: f32[1,128], index: 3, kind: input, shape index: {}]   ;;  %s2905_s8 = inlined_call_operand.vmem [shape: f32[2,8,32], index: 8, kind: input, shape index: {}]   ;;  %s2906_s4 = inlined_call_operand.vmem [shape: bf16[32,128], index: 4, kind: input, shape index: {}]   ;;  %s2907_s5 = inlined_call_operand.vmem [shape: bf16[32,128], index: 5, kind: input, shape index: {}]   ;;  %s2908_s6 = inlined_call_operand.vmem [shape: f32[1,128], index: 6, kind: input, shape index: {}]   ;;  %s2909_s9 = inlined_call_operand.vmem [shape: bf16[32,128], index: 9, kind: input, shape index: {}]   ;;  %s2910_s13 = inlined_call_operand.vmem [shape: f32[2,8,32], index: 13, kind: output, shape index: {2}]   ;;  %s2911_s10 = inlined_call_operand.vmem [shape: f32[1,128], index: 10, kind: input, shape index: {}]   ;;  %s2912_s12 = inlined_call_operand.vmem [shape: f32[2,8,32], index: 12, kind: output, shape index: {1}]   ;;  %s2913_s11 = inlined_call_operand.vmem [shape: f32[8,128], index: 11, kind: output, shape index: {0}]  }
   0x1   :  { %v2233_v0 = vld [vmem:[%s2900_s1] sm:$0xff]   ;;  %1988 = vmatprep.subr.bf16.mxu1 %v2382_v1  ;;  %1992 = vmatprep.mubr.msk.bf16.mxu1 %vm2383_vm0, %v2382_v1  ;;  %v2235_v3 = vld [vmem:[%s2900_s1 + $0x8] sm:$0xff]   ;;  %v2239_v32 = vld [vmem:[%s2902_s0 + $0x10] sm:$0xff]  }
   0x2   :  { %v2466_v2 = vld [vmem:[%s2901_s2] sm:$0xff]   ;;  %1976 = vmatprep.subr.bf16.mxu0 %v2233_v0  ;;  %v2475_v4 = vld [vmem:[%s2901_s2 + $0x8] sm:$0xff]   ;;  %v2240_v33 = vld [vmem:[%s2902_s0 + $0x18] sm:$0xff]  }
   0x3   :  { %1977 = vmatpush3.bf16.msra.mxu0 %v2233_v0  ;;  %1989 = vmatpush3.bf16.msra.mxu1 %v2466_v2  ;;  %v2237_v5 = vld [vmem:[%s2902_s0] sm:$0xff]   ;;  %v2238_v6 = vld [vmem:[%s2902_s0 + $0x8] sm:$0xff]   ;;  %s2385_s0 = smov 64  }
   0x4   :  { %1978 = vmatprep.subr.bf16.mxu0 %v2235_v3  ;;  %1990 = vmatprep.subr.bf16.mxu1 %v2382_v1  ;;  %v184_v7 = vld [vmem:[%s2903_s7] sm:$0xff]  ;;  %v2537_v35 = vld [vmem:[%s2906_s4 + $0x8] sm:$0xff]  }
   0x5   :  { %1980 = vmatprep.mubr.msk.bf16.mxu0 %vm106_vm1, %v2237_v5  ;;  %v190_v8 = vpack.c.bf16 %v184_v7, %v184_v7  ;;  %v2502_v9 = vld [vmem:[%s2904_s3] ss:$0 sm:$0xff]  ;;  %v2565_v46 = vld [vmem:[%s2907_s5 + $0x8] sm:$0xff]  }
   0x6   :  { %v187_v21 = vld [vmem:[%s2905_s8] sm:$0xff]  ;;  %v1840_v47 = vld [vmem:[%s2903_s7 + $0x8] sm:$0xff] }
   0x7   :  { %1979 = vmatpush3.bf16.msra.mxu0 %v2235_v3  ;;  %1991 = vmatpush3.bf16.msra.mxu1 %v2475_v4  ;;  %v2529_v34 = vld [vmem:[%s2906_s4] sm:$0xff]   ;;  %v276_v48 = vpack.c.bf16 %v1840_v47, %v1840_v47  ;;  %v1841_v63 = vld [vmem:[%s2905_s8 + $0x8] sm:$0xff] }
   0x8   :  { %2012 = vmatprep.subr.bf16.mxu0 %v2382_v1  ;;  %1996 = vmatprep.subr.bf16.mxu1 %v2382_v1  ;;  %v2557_v44 = vld [vmem:[%s2907_s5] sm:$0xff]  }
   0x9   :  { %v2593_v55 = vld [vmem:[%s2908_s6] ss:$0 sm:$0xff] }
   0xa   :  { %1981 = vmatmul.mubr.msk.bf16.vlgmr.msra.gmra.mrb[0].mxu0 %vm106_vm1, %v2238_v6  ;;  %1993 = vmatmul.mubr.msk.bf16.vlgmr.msra.gmra.mrb[0].mxu1 %vm106_vm1, %v190_v8 }
   0xb   :  { %2013 = vmatpush3.bf16.msra.mxu0 %v2466_v2  ;;  %2000 = vmatprep.mubr.msk.bf16.mxu1 %vm2383_vm0, %v2382_v1 }
   0xc   :  { %2014 = vmatprep.subr.bf16.mxu0 %v2382_v1  ;;  %1984 = vmatprep.mubr.msk.bf16.mxu0 %vm106_vm1, %v2239_v32 }
   0xd   :  { %1997 = vmatpush3.bf16.msra.mxu1 %v2529_v34 }
   0xe   :  { %1998 = vmatprep.subr.bf16.mxu1 %v2382_v1 }
   0xf   :  { %2015 = vmatpush3.bf16.msra.mxu0 %v2475_v4 }
  0x10   :  { %2020 = vmatprep.subr.bf16.mxu0 %v2382_v1 }
  0x11   :  { %1999 = vmatpush3.bf16.msra.mxu1 %v2537_v35 }
  0x12   :  { %1985 = vmatmul.mubr.msk.bf16.gmra.mrb[4].mxu0 %vm106_vm1, %v2240_v33  ;;  %2004 = vmatprep.subr.bf16.mxu1 %v2382_v1 }
  0x13   :  { %2016 = vmatprep.mubr.msk.bf16.mxu0 %vm2383_vm0, %v2382_v1 }
  0xdd   :  { %v2504_v10 = vpop.f32.mrb[0].mxu0  ;;  %v240_v11 = vpop.f32.mrb[0].mxu1 }
  0xde   :  { %v153_v12 = vpop.f32.mrb[1].mxu0  ;;  %v1994_v13 = vpop.f32.mrb[1].mxu1 }
  0xdf   :  { %v154_v14 = vadd.f32 %v2502_v9, %v153_v12  ;;  %v2507_v15 = vpop.f32.mrb[2].mxu0  ;;  %v243_v16 = vpop.f32.mrb[2].mxu1 }
  0xe0   :  { %v2509_v17 = vpop.f32.mrb[3].mxu0  ;;  %v1995_v18 = vpop.f32.mrb[3].mxu1 }
  0xe1   :  { %v246_v19 = vadd.f32 %v240_v11, %v154_v14  ;;  %v157_v49 = vadd.f32 %v2502_v9, %v2509_v17 }
  0xe3   :  { %2247 = vtanh.f32 %v246_v19  ;;  %v1845_v22 = vmul.f32 -1.442695, %v246_v19 }
  0xe5   :  { %2249 = vpow2.f32 %v1845_v22  ;;  %v2546_v40 = vpop.f32.mrb[4].mxu0 }
  0xe6   :  { %v2548_v41 = vpop.f32.mrb[5].mxu0 }
  0xe7   :  { %v2550_v42 = vpop.f32.mrb[6].mxu0 }
  0xe8   :  { %v2552_v43 = vpop.f32.mrb[7].mxu0 }
  0xed   :  { %v2248_v20 = vpop.eup %2247 }
  0xee   :  { %260 = vrot.lane.b32.xlu0 %v2248_v20, %s2384_s22 }
  0xef   :  { %v2250_v23 = vpop.eup %2249 }
  0xf0   :  { %v250_v24 = vadd.f32 1.0, %v2250_v23 }
  0xf2   :  { %255 = vrot.lane.b32.xlu0 %v187_v21, %s2384_s22  ;;  %2251 = vrcp.f32 %v250_v24 }
  0xfc   :  { %v2252_v25 = vpop.eup %2251 }
 0x160   :  { %v261_v26 = vpop.permute.xlu0 %260 }
 0x161   :  { %v263_v27 = vmul.f32 %v2252_v25, %v261_v26 }
 0x163   :  { %265 = vrot.lane.b32.xlu1 %v263_v27, %s2384_s22 }
 0x164   :  { %v256_v28 = vpop.permute.xlu0 %255 }
 0x165   :  { %v258_v29 = vmul.f32 %v2252_v25, %v256_v28 }
 0x1d5   :  { %v266_v30 = vpop.permute.xlu1 %265 }
 0x1d6   :  { %v2517_v31 = vadd.f32 %v266_v30, %v258_v29 }
 0x1d8   :  { %2253 = vtanh.f32 %v2517_v31 }
 0x1e2   :  { %v2254_v36 = vpop.eup %2253 }
 0x1e3   :  { %271 = vrot.lane.b32.xlu1 %v2254_v36, %s2384_s22 }
 0x255   :  { %v272_v37 = vpop.permute.xlu1 %271 }
 0x256   :  { %v274_v38 = vmul.f32 %v2252_v25, %v272_v37  ;;  %v162_v37 = vadd.f32 %v2504_v10, %v2502_v9 }
 0x258   :  { %v275_v39 = vpack.c.bf16 %v274_v38, %v274_v38 }
 0x25a   :  { %284 = vrot.lane.b32.xlu0 %v275_v39, %s2385_s0 }
 0x2cc   :  { %v285_v45 = vpop.permute.xlu0 %284 }
 0x2cd   :  { %2001 = vmatmul.mubr.msk.bf16.vlgmr.msra.gmra.mrb[4].mxu1 %vm106_vm1, %v285_v45  ;;  %2017 = vmatmul.mubr.msk.bf16.vlgmr.msra.gmra.mrb[8].mxu0 %vm106_vm1, %v285_v45 }
 0x2ce   :  { %2005 = vmatpush3.bf16.msra.mxu1 %v2557_v44  ;;  %2008 = vmatprep.mubr.msk.bf16.mxu1 %vm2383_vm0, %v2382_v1 }
 0x2cf   :  { %2006 = vmatprep.subr.bf16.mxu1 %v2382_v1  ;;  %2021 = vmatpush3.bf16.msra.mxu0 %v2529_v34 }
 0x2d0   :  { %2022 = vmatprep.subr.bf16.mxu0 %v2382_v1  ;;  %2024 = vmatprep.mubr.msk.bf16.mxu0 %vm2383_vm0, %v2382_v1 }
 0x2d2   :  { %2007 = vmatpush3.bf16.msra.mxu1 %v2565_v46 }
 0x2d3   :  { %2036 = vmatprep.subr.bf16.mxu1 %v2382_v1  ;;  %2023 = vmatpush3.bf16.msra.mxu0 %v2537_v35 }
 0x2d4   :  { %2028 = vmatprep.subr.bf16.mxu0 %v2382_v1 }
 0x2d9   :  { %2009 = vmatmul.mubr.msk.bf16.vlgmr.msra.gmra.mrb[4].mxu1 %vm106_vm1, %v276_v48 }
 0x2da   :  { %2037 = vmatpush3.bf16.msra.mxu1 %v2466_v2  ;;  %2040 = vmatprep.mubr.msk.bf16.mxu1 %vm2383_vm0, %v2382_v1 }
 0x2db   :  { %2038 = vmatprep.subr.bf16.mxu1 %v2382_v1 }
 0x2de   :  { %2039 = vmatpush3.bf16.msra.mxu1 %v2475_v4 }
 0x2df   :  { %2044 = vmatprep.subr.bf16.mxu1 %v2382_v1 }
 0x3a0   :  { %v459_v50 = vpop.f32.mrb[8].mxu0 }
 0x3a1   :  { %v465_v51 = vadd.f32 %v459_v50, %v157_v49  ;;  %v2018_v52 = vpop.f32.mrb[9].mxu0 }
 0x3a2   :  { %v462_v53 = vpop.f32.mrb[10].mxu0 }
 0x3a3   :  { %2255 = vtanh.f32 %v465_v51  ;;  %v2019_v54 = vpop.f32.mrb[11].mxu0  ;;  %v1855_v0 = vmul.f32 -1.442695, %v465_v51 }
 0x3ac   :  { %v390_v56 = vpop.f32.mrb[4].mxu1 }
 0x3ad   :  { %v2256_v57 = vpop.eup %2255  ;;  %v2188_v58 = vadd.f32 %v2593_v55, %v390_v56  ;;  %v2010_v59 = vpop.f32.mrb[5].mxu1 }
 0x3ae   :  { %475 = vrot.lane.b32.xlu1 %v2256_v57, %s2384_s22  ;;  %v393_v60 = vpop.f32.mrb[6].mxu1 }
 0x3af   :  { %2257 = vtanh.f32 %v2188_v58  ;;  %v2011_v61 = vpop.f32.mrb[7].mxu1  ;;  %v1853_v3 = vmul.f32 -1.442695, %v2188_v58 }
 0x3b0   :  { %2259 = vpow2.f32 %v1855_v0 }
 0x3b1   :  { %2261 = vpow2.f32 %v1853_v3 }
 0x3b9   :  { %v2258_v62 = vpop.eup %2257 }
 0x3ba   :  { %410 = vrot.lane.b32.xlu0 %v2258_v62, %s2384_s22  ;;  %v2260_v5 = vpop.eup %2259 }
 0x3bb   :  { %v469_v6 = vadd.f32 1.0, %v2260_v5  ;;  %v2262_v7 = vpop.eup %2261 }
 0x3bc   :  { %v400_v8 = vadd.f32 1.0, %v2262_v7 }
 0x3bd   :  { %2263 = vrcp.f32 %v469_v6 }
 0x3be   :  { %405 = vrot.lane.b32.xlu0 %v1841_v63, %s2384_s22  ;;  %2265 = vrcp.f32 %v400_v8 }
 0x3c7   :  { %v2264_v11 = vpop.eup %2263 }
 0x3c8   :  { %v2266_v14 = vpop.eup %2265  ;;  %v473_v18 = vmul.f32 %v2264_v11, %v2517_v31 }
 0x420   :  { %v476_v12 = vpop.permute.xlu1 %475 }
 0x421   :  { %v478_v13 = vmul.f32 %v2264_v11, %v476_v12 }
 0x423   :  { %480 = vrot.lane.b32.xlu1 %v478_v13, %s2384_s22 }
 0x42c   :  { %v411_v16 = vpop.permute.xlu0 %410 }
 0x42d   :  { %v413_v17 = vmul.f32 %v2266_v14, %v411_v16 }
 0x42f   :  { %415 = vrot.lane.b32.xlu1 %v413_v17, %s2384_s22 }
 0x430   :  { %v406_v21 = vpop.permute.xlu0 %405 }
 0x431   :  { %v408_v22 = vmul.f32 %v2266_v14, %v406_v21 }
 0x495   :  { %v481_v19 = vpop.permute.xlu1 %480 }
 0x496   :  { %v2605_v20 = vadd.f32 %v481_v19, %v473_v18 }
 0x498   :  { %2267 = vtanh.f32 %v2605_v20 }
 0x4a1   :  { %v416_v23 = vpop.permute.xlu1 %415 }
 0x4a2   :  { %v2268_v24 = vpop.eup %2267  ;;  %v2608_v25 = vadd.f32 %v416_v23, %v408_v22 }
 0x4a3   :  { %486 = vrot.lane.b32.xlu0 %v2268_v24, %s2384_s22 }
 0x4a4   :  { %2269 = vtanh.f32 %v2608_v25 }
 0x4ae   :  { %v2270_v26 = vpop.eup %2269 }
 0x4af   :  { %421 = vrot.lane.b32.xlu1 %v2270_v26, %s2384_s22  ;;  %v165_v26 = vadd.f32 %v2507_v15, %v2502_v9 }
 0x515   :  { %v487_v27 = vpop.permute.xlu0 %486 }
 0x516   :  { %v489_v28 = vmul.f32 %v2264_v11, %v487_v27 }
 0x518   :  { %v490_v29 = vpack.c.bf16 %v489_v28, %v489_v28 }
 0x51a   :  { %493 = vrot.lane.b32.xlu0 %v490_v29, %s2385_s0 }
 0x521   :  { %v422_v30 = vpop.permute.xlu1 %421 }
 0x522   :  { %v424_v31 = vmul.f32 %v2266_v14, %v422_v30 }
 0x524   :  { %v491_v32 = vpack.c.bf16 %v424_v31, %v424_v31 }
 0x526   :  { %539 = vrot.lane.b32.xlu1 %v491_v32, %s2385_s0 }
 0x58c   :  { %v494_v33 = vpop.permute.xlu0 %493 }
 0x58d   :  { %2025 = vmatmul.mubr.msk.bf16.vlgmr.msra.gmra.mrb[12].mxu0 %vm106_vm1, %v494_v33  ;;  %2041 = vmatmul.mubr.msk.bf16.vlgmr.msra.gmra.mrb[8].mxu1 %vm106_vm1, %v494_v33 }
 0x58e   :  { %2029 = vmatpush3.bf16.msra.mxu0 %v2557_v44  ;;  %2032 = vmatprep.mubr.msk.bf16.mxu0 %vm2383_vm0, %v2382_v1 }
 0x58f   :  { %2030 = vmatprep.subr.bf16.mxu0 %v2382_v1  ;;  %2045 = vmatpush3.bf16.msra.mxu1 %v2529_v34 }
 0x590   :  { %2046 = vmatprep.subr.bf16.mxu1 %v2382_v1  ;;  %2048 = vmatprep.mubr.msk.bf16.mxu1 %vm2383_vm0, %v2382_v1 }
 0x592   :  { %2031 = vmatpush3.bf16.msra.mxu0 %v2565_v46 }
 0x593   :  { %2060 = vmatprep.subr.bf16.mxu0 %v2382_v1  ;;  %2047 = vmatpush3.bf16.msra.mxu1 %v2537_v35 }
 0x594   :  { %2052 = vmatprep.subr.bf16.mxu1 %v2382_v1 }
 0x598   :  { %v540_v36 = vpop.permute.xlu1 %539 }
 0x599   :  { %2033 = vmatmul.mubr.msk.bf16.vlgmr.msra.gmra.mrb[12].mxu0 %vm106_vm1, %v540_v36 }
 0x59a   :  { %2061 = vmatpush3.bf16.msra.mxu0 %v2466_v2  ;;  %2064 = vmatprep.mubr.msk.bf16.mxu0 %vm2383_vm0, %v2382_v1 }
 0x59b   :  { %2062 = vmatprep.subr.bf16.mxu0 %v2382_v1 }
 0x59e   :  { %2063 = vmatpush3.bf16.msra.mxu0 %v2475_v4 }
 0x59f   :  { %2068 = vmatprep.subr.bf16.mxu0 %v2382_v1 }
 0x660   :  { %v643_v38 = vpop.f32.mrb[8].mxu1 }
 0x661   :  { %v649_v39 = vadd.f32 %v643_v38, %v162_v37  ;;  %v2042_v45 = vpop.f32.mrb[9].mxu1 }
 0x662   :  { %v646_v47 = vpop.f32.mrb[10].mxu1 }
 0x663   :  { %2271 = vtanh.f32 %v649_v39  ;;  %v2043_v48 = vpop.f32.mrb[11].mxu1  ;;  %v1860_v10 = vmul.f32 -1.442695, %v649_v39 }
 0x66c   :  { %v578_v49 = vpop.f32.mrb[12].mxu0 }
 0x66d   :  { %v2272_v50 = vpop.eup %2271  ;;  %v2189_v51 = vadd.f32 %v2593_v55, %v578_v49  ;;  %v2034_v52 = vpop.f32.mrb[13].mxu0 }
 0x66e   :  { %v581_v53 = vpop.f32.mrb[14].mxu0  ;;  %659 = vrot.lane.b32.xlu0 %v2272_v50, %s2384_s22 }
 0x66f   :  { %2273 = vtanh.f32 %v2189_v51  ;;  %v2035_v54 = vpop.f32.mrb[15].mxu0  ;;  %v1858_v57 = vmul.f32 -1.442695, %v2189_v51 }
 0x670   :  { %2275 = vpow2.f32 %v1860_v10 }
 0x671   :  { %2277 = vpow2.f32 %v1858_v57 }
 0x679   :  { %v2274_v56 = vpop.eup %2273 }
 0x67a   :  { %594 = vrot.lane.b32.xlu1 %v2274_v56, %s2384_s22  ;;  %v2276_v58 = vpop.eup %2275 }
 0x67b   :  { %v653_v59 = vadd.f32 1.0, %v2276_v58  ;;  %v2278_v60 = vpop.eup %2277 }
 0x67c   :  { %v588_v61 = vadd.f32 1.0, %v2278_v60 }
 0x67d   :  { %2279 = vrcp.f32 %v653_v59 }
 0x67e   :  { %2281 = vrcp.f32 %v588_v61 }
 0x687   :  { %v2280_v62 = vpop.eup %2279 }
 0x688   :  { %v2282_v3 = vpop.eup %2281  ;;  %v657_v7 = vmul.f32 %v2280_v62, %v2605_v20 }
 0x689   :  { %v592_v12 = vmul.f32 %v2282_v3, %v2608_v25 }
 0x6e0   :  { %v660_v63 = vpop.permute.xlu0 %659 }
 0x6e1   :  { %v662_v0 = vmul.f32 %v2280_v62, %v660_v63 }
 0x6e3   :  { %664 = vrot.lane.b32.xlu0 %v662_v0, %s2384_s22 }
 0x6ec   :  { %v595_v5 = vpop.permute.xlu1 %594 }
 0x6ed   :  { %v597_v6 = vmul.f32 %v2282_v3, %v595_v5 }
 0x6ef   :  { %599 = vrot.lane.b32.xlu1 %v597_v6, %s2384_s22 }
 0x755   :  { %v665_v8 = vpop.permute.xlu0 %664 }
 0x756   :  { %v2644_v11 = vadd.f32 %v665_v8, %v657_v7 }
 0x758   :  { %2283 = vtanh.f32 %v2644_v11 }
 0x761   :  { %v600_v13 = vpop.permute.xlu1 %599 }
 0x762   :  { %v2284_v14 = vpop.eup %2283  ;;  %v2648_v16 = vadd.f32 %v600_v13, %v592_v12 }
 0x763   :  { %670 = vrot.lane.b32.xlu0 %v2284_v14, %s2384_s22 }
 0x764   :  { %2285 = vtanh.f32 %v2648_v16 }
 0x76e   :  { %v2286_v17 = vpop.eup %2285 }
 0x76f   :  { %605 = vrot.lane.b32.xlu1 %v2286_v17, %s2384_s22 }
 0x7d5   :  { %v671_v18 = vpop.permute.xlu0 %670 }
 0x7d6   :  { %v673_v19 = vmul.f32 %v2280_v62, %v671_v18 }
 0x7d8   :  { %v674_v20 = vpack.c.bf16 %v673_v19, %v673_v19 }
 0x7da   :  { %677 = vrot.lane.b32.xlu0 %v674_v20, %s2385_s0 }
 0x7e1   :  { %v606_v21 = vpop.permute.xlu1 %605 }
 0x7e2   :  { %v608_v22 = vmul.f32 %v2282_v3, %v606_v21 }
 0x7e4   :  { %v675_v23 = vpack.c.bf16 %v608_v22, %v608_v22 }
 0x7e6   :  { %723 = vrot.lane.b32.xlu1 %v675_v23, %s2385_s0 }
 0x84c   :  { %v678_v24 = vpop.permute.xlu0 %677 }
 0x84d   :  { %2049 = vmatmul.mubr.msk.bf16.vlgmr.msra.gmra.mrb[12].mxu1 %vm106_vm1, %v678_v24  ;;  %2065 = vmatmul.mubr.msk.bf16.vlgmr.msra.gmra.mrb[16].mxu0 %vm106_vm1, %v678_v24 }
 0x84e   :  { %2053 = vmatpush3.bf16.msra.mxu1 %v2557_v44  ;;  %2056 = vmatprep.mubr.msk.bf16.mxu1 %vm2383_vm0, %v2382_v1 }
 0x84f   :  { %2054 = vmatprep.subr.bf16.mxu1 %v2382_v1  ;;  %2069 = vmatpush3.bf16.msra.mxu0 %v2529_v34 }
 0x850   :  { %2070 = vmatprep.subr.bf16.mxu0 %v2382_v1  ;;  %2072 = vmatprep.mubr.msk.bf16.mxu0 %vm2383_vm0, %v2382_v1 }
 0x852   :  { %2055 = vmatpush3.bf16.msra.mxu1 %v2565_v46 }
 0x853   :  { %2084 = vmatprep.subr.bf16.mxu1 %v2382_v1  ;;  %2071 = vmatpush3.bf16.msra.mxu0 %v2537_v35 }
 0x854   :  { %2076 = vmatprep.subr.bf16.mxu0 %v2382_v1 }
 0x858   :  { %v724_v25 = vpop.permute.xlu1 %723 }
 0x859   :  { %2057 = vmatmul.mubr.msk.bf16.vlgmr.msra.gmra.mrb[12].mxu1 %vm106_vm1, %v724_v25 }
 0x85a   :  { %2085 = vmatpush3.bf16.msra.mxu1 %v2466_v2  ;;  %2088 = vmatprep.mubr.msk.bf16.mxu1 %vm2383_vm0, %v2382_v1 }
 0x85b   :  { %2086 = vmatprep.subr.bf16.mxu1 %v2382_v1 }
 0x85e   :  { %2087 = vmatpush3.bf16.msra.mxu1 %v2475_v4 }
 0x85f   :  { %2092 = vmatprep.subr.bf16.mxu1 %v2382_v1 }
 0x920   :  { %v827_v27 = vpop.f32.mrb[16].mxu0 }
 0x921   :  { %v833_v28 = vadd.f32 %v827_v27, %v165_v26  ;;  %v2066_v29 = vpop.f32.mrb[17].mxu0 }
 0x922   :  { %v830_v30 = vpop.f32.mrb[18].mxu0 }
 0x923   :  { %2287 = vtanh.f32 %v833_v28  ;;  %v2067_v31 = vpop.f32.mrb[19].mxu0  ;;  %v1865_v15 = vmul.f32 -1.442695, %v833_v28 }
 0x92c   :  { %v762_v32 = vpop.f32.mrb[12].mxu1 }
 0x92d   :  { %v2288_v33 = vpop.eup %2287  ;;  %v2190_v36 = vadd.f32 %v2593_v55, %v762_v32  ;;  %v2058_v37 = vpop.f32.mrb[13].mxu1 }
 0x92e   :  { %843 = vrot.lane.b32.xlu0 %v2288_v33, %s2384_s22  ;;  %v765_v38 = vpop.f32.mrb[14].mxu1 }
 0x92f   :  { %2289 = vtanh.f32 %v2190_v36  ;;  %v2059_v39 = vpop.f32.mrb[15].mxu1  ;;  %v1863_v47 = vmul.f32 -1.442695, %v2190_v36 }
 0x930   :  { %2291 = vpow2.f32 %v1865_v15 }
 0x931   :  { %2293 = vpow2.f32 %v1863_v47 }
 0x939   :  { %v2290_v45 = vpop.eup %2289 }
 0x93a   :  { %778 = vrot.lane.b32.xlu1 %v2290_v45, %s2384_s22  ;;  %v2292_v48 = vpop.eup %2291 }
 0x93b   :  { %v837_v49 = vadd.f32 1.0, %v2292_v48  ;;  %v2294_v50 = vpop.eup %2293 }
 0x93c   :  { %v772_v51 = vadd.f32 1.0, %v2294_v50 }
 0x93d   :  { %2295 = vrcp.f32 %v837_v49 }
 0x93e   :  { %2297 = vrcp.f32 %v772_v51 }
 0x947   :  { %v2296_v52 = vpop.eup %2295 }
 0x948   :  { %v2298_v56 = vpop.eup %2297  ;;  %v841_v58 = vmul.f32 %v2296_v52, %v2644_v11 }
 0x949   :  { %v776_v61 = vmul.f32 %v2298_v56, %v2648_v16  ;;  %v170_v16 = vadd.f32 %v2502_v9, %v2548_v41 }
 0x9a0   :  { %v844_v53 = vpop.permute.xlu0 %843 }
 0x9a1   :  { %v846_v54 = vmul.f32 %v2296_v52, %v844_v53 }
 0x9a3   :  { %848 = vrot.lane.b32.xlu0 %v846_v54, %s2384_s22 }
 0x9ac   :  { %v779_v10 = vpop.permute.xlu1 %778 }
 0x9ad   :  { %v781_v57 = vmul.f32 %v2298_v56, %v779_v10 }
 0x9af   :  { %783 = vrot.lane.b32.xlu1 %v781_v57, %s2384_s22 }
 0xa15   :  { %v849_v59 = vpop.permute.xlu0 %848 }
 0xa16   :  { %v2684_v60 = vadd.f32 %v849_v59, %v841_v58 }
 0xa18   :  { %2299 = vtanh.f32 %v2684_v60 }
 0xa21   :  { %v784_v62 = vpop.permute.xlu1 %783 }
 0xa22   :  { %v2300_v63 = vpop.eup %2299  ;;  %v2688_v0 = vadd.f32 %v784_v62, %v776_v61 }
 0xa23   :  { %854 = vrot.lane.b32.xlu0 %v2300_v63, %s2384_s22  ;;  %v173_v63 = vadd.f32 %v2502_v9, %v2552_v43 }
 0xa24   :  { %2301 = vtanh.f32 %v2688_v0 }
 0xa2e   :  { %v2302_v3 = vpop.eup %2301 }
 0xa2f   :  { %789 = vrot.lane.b32.xlu1 %v2302_v3, %s2384_s22 }
 0xa95   :  { %v855_v5 = vpop.permute.xlu0 %854 }
 0xa96   :  { %v857_v6 = vmul.f32 %v2296_v52, %v855_v5 }
 0xa98   :  { %v858_v7 = vpack.c.bf16 %v857_v6, %v857_v6 }
 0xa9a   :  { %861 = vrot.lane.b32.xlu0 %v858_v7, %s2385_s0 }
 0xaa1   :  { %v790_v8 = vpop.permute.xlu1 %789 }
 0xaa2   :  { %v792_v11 = vmul.f32 %v2298_v56, %v790_v8 }
 0xaa4   :  { %v859_v12 = vpack.c.bf16 %v792_v11, %v792_v11 }
 0xaa6   :  { %907 = vrot.lane.b32.xlu1 %v859_v12, %s2385_s0 }
 0xb0c   :  { %v862_v13 = vpop.permute.xlu0 %861 }
 0xb0d   :  { %2073 = vmatmul.mubr.msk.bf16.vlgmr.msra.gmra.mrb[20].mxu0 %vm106_vm1, %v862_v13  ;;  %2089 = vmatmul.mubr.msk.bf16.vlgmr.msra.gmra.mrb[16].mxu1 %vm106_vm1, %v862_v13 }
 0xb0e   :  { %2077 = vmatpush3.bf16.msra.mxu0 %v2557_v44  ;;  %2080 = vmatprep.mubr.msk.bf16.mxu0 %vm2383_vm0, %v2382_v1 }
 0xb0f   :  { %2078 = vmatprep.subr.bf16.mxu0 %v2382_v1  ;;  %2093 = vmatpush3.bf16.msra.mxu1 %v2529_v34 }
 0xb10   :  { %2094 = vmatprep.subr.bf16.mxu1 %v2382_v1  ;;  %2096 = vmatprep.mubr.msk.bf16.mxu1 %vm2383_vm0, %v2382_v1 }
 0xb12   :  { %2079 = vmatpush3.bf16.msra.mxu0 %v2565_v46 }
 0xb13   :  { %2108 = vmatprep.subr.bf16.mxu0 %v2382_v1  ;;  %2095 = vmatpush3.bf16.msra.mxu1 %v2537_v35 }
 0xb14   :  { %2100 = vmatprep.subr.bf16.mxu1 %v2382_v1 }
 0xb18   :  { %v908_v14 = vpop.permute.xlu1 %907 }
 0xb19   :  { %2081 = vmatmul.mubr.msk.bf16.vlgmr.msra.gmra.mrb[20].mxu0 %vm106_vm1, %v908_v14 }
 0xb1a   :  { %2109 = vmatpush3.bf16.msra.mxu0 %v2466_v2  ;;  %2112 = vmatprep.mubr.msk.bf16.mxu0 %vm2383_vm0, %v2382_v1 }
 0xb1b   :  { %2110 = vmatprep.subr.bf16.mxu0 %v2382_v1 }
 0xb1e   :  { %2111 = vmatpush3.bf16.msra.mxu0 %v2475_v4 }
 0xb1f   :  { %2116 = vmatprep.subr.bf16.mxu0 %v2382_v1 }
 0xbe0   :  { %v1011_v17 = vpop.f32.mrb[16].mxu1 }
 0xbe1   :  { %v1017_v18 = vadd.f32 %v1011_v17, %v170_v16  ;;  %v2090_v19 = vpop.f32.mrb[17].mxu1 }
 0xbe2   :  { %v1014_v20 = vpop.f32.mrb[18].mxu1 }
 0xbe3   :  { %2303 = vtanh.f32 %v1017_v18  ;;  %v2091_v21 = vpop.f32.mrb[19].mxu1  ;;  %v1870_v41 = vmul.f32 -1.442695, %v1017_v18 }
 0xbec   :  { %v946_v22 = vpop.f32.mrb[20].mxu0 }
 0xbed   :  { %v2304_v23 = vpop.eup %2303  ;;  %v2191_v24 = vadd.f32 %v2593_v55, %v946_v22  ;;  %v2082_v25 = vpop.f32.mrb[21].mxu0 }
 0xbee   :  { %v949_v26 = vpop.f32.mrb[22].mxu0  ;;  %1027 = vrot.lane.b32.xlu0 %v2304_v23, %s2384_s22 }
 0xbef   :  { %2305 = vtanh.f32 %v2191_v24  ;;  %v2083_v27 = vpop.f32.mrb[23].mxu0  ;;  %v1868_v29 = vmul.f32 -1.442695, %v2191_v24 }
 0xbf0   :  { %2307 = vpow2.f32 %v1870_v41 }
 0xbf1   :  { %2309 = vpow2.f32 %v1868_v29 }
 0xbf9   :  { %v2306_v28 = vpop.eup %2305 }
 0xbfa   :  { %962 = vrot.lane.b32.xlu1 %v2306_v28, %s2384_s22  ;;  %v2308_v30 = vpop.eup %2307 }
 0xbfb   :  { %v1021_v31 = vadd.f32 1.0, %v2308_v30  ;;  %v2310_v32 = vpop.eup %2309 }
 0xbfc   :  { %v956_v33 = vadd.f32 1.0, %v2310_v32 }
 0xbfd   :  { %2311 = vrcp.f32 %v1021_v31 }
 0xbfe   :  { %2313 = vrcp.f32 %v956_v33 }
 0xc07   :  { %v2312_v36 = vpop.eup %2311 }
 0xc08   :  { %v2314_v39 = vpop.eup %2313  ;;  %v1025_v47 = vmul.f32 %v2312_v36, %v2684_v60 }
 0xc09   :  { %v960_v50 = vmul.f32 %v2314_v39, %v2688_v0 }
 0xc60   :  { %v1028_v37 = vpop.permute.xlu0 %1027 }
 0xc61   :  { %v1030_v38 = vmul.f32 %v2312_v36, %v1028_v37 }
 0xc63   :  { %1032 = vrot.lane.b32.xlu0 %v1030_v38, %s2384_s22 }
 0xc6c   :  { %v963_v45 = vpop.permute.xlu1 %962 }
 0xc6d   :  { %v965_v15 = vmul.f32 %v2314_v39, %v963_v45 }
 0xc6f   :  { %967 = vrot.lane.b32.xlu1 %v965_v15, %s2384_s22 }
 0xcd5   :  { %v1033_v48 = vpop.permute.xlu0 %1032 }
 0xcd6   :  { %v2724_v49 = vadd.f32 %v1033_v48, %v1025_v47 }
 0xcd8   :  { %2315 = vtanh.f32 %v2724_v49 }
 0xce1   :  { %v968_v51 = vpop.permute.xlu1 %967 }
 0xce2   :  { %v2316_v52 = vpop.eup %2315  ;;  %v2728_v53 = vadd.f32 %v968_v51, %v960_v50  ;;  %v178_v51 = vadd.f32 %v2546_v40, %v2502_v9 }
 0xce3   :  { %1038 = vrot.lane.b32.xlu0 %v2316_v52, %s2384_s22 }
 0xce4   :  { %2317 = vtanh.f32 %v2728_v53 }
 0xcee   :  { %v2318_v54 = vpop.eup %2317 }
 0xcef   :  { %973 = vrot.lane.b32.xlu1 %v2318_v54, %s2384_s22 }
 0xd55   :  { %v1039_v56 = vpop.permute.xlu0 %1038 }
 0xd56   :  { %v1041_v10 = vmul.f32 %v2312_v36, %v1039_v56 }
 0xd58   :  { %v1042_v57 = vpack.c.bf16 %v1041_v10, %v1041_v10 }
 0xd5a   :  { %1045 = vrot.lane.b32.xlu0 %v1042_v57, %s2385_s0 }
 0xd61   :  { %v974_v58 = vpop.permute.xlu1 %973 }
 0xd62   :  { %v976_v59 = vmul.f32 %v2314_v39, %v974_v58 }
 0xd64   :  { %v1043_v60 = vpack.c.bf16 %v976_v59, %v976_v59 }
 0xd66   :  { %1091 = vrot.lane.b32.xlu1 %v1043_v60, %s2385_s0 }
 0xdcc   :  { %v1046_v61 = vpop.permute.xlu0 %1045 }
 0xdcd   :  { %2097 = vmatmul.mubr.msk.bf16.vlgmr.msra.gmra.mrb[20].mxu1 %vm106_vm1, %v1046_v61  ;;  %2113 = vmatmul.mubr.msk.bf16.vlgmr.msra.gmra.mrb[24].mxu0 %vm106_vm1, %v1046_v61 }
 0xdce   :  { %2101 = vmatpush3.bf16.msra.mxu1 %v2557_v44  ;;  %2104 = vmatprep.mubr.msk.bf16.mxu1 %vm2383_vm0, %v2382_v1 }
 0xdcf   :  { %2102 = vmatprep.subr.bf16.mxu1 %v2382_v1  ;;  %2117 = vmatpush3.bf16.msra.mxu0 %v2529_v34 }
 0xdd0   :  { %2118 = vmatprep.subr.bf16.mxu0 %v2382_v1  ;;  %2120 = vmatprep.mubr.msk.bf16.mxu0 %vm2383_vm0, %v2382_v1 }
 0xdd2   :  { %2103 = vmatpush3.bf16.msra.mxu1 %v2565_v46 }
 0xdd3   :  { %2132 = vmatprep.subr.bf16.mxu1 %v2382_v1  ;;  %2119 = vmatpush3.bf16.msra.mxu0 %v2537_v35 }
 0xdd4   :  { %2124 = vmatprep.subr.bf16.mxu0 %v2382_v1 }
 0xdd8   :  { %v1092_v62 = vpop.permute.xlu1 %1091 }
 0xdd9   :  { %2105 = vmatmul.mubr.msk.bf16.vlgmr.msra.gmra.mrb[20].mxu1 %vm106_vm1, %v1092_v62 }
 0xdda   :  { %2133 = vmatpush3.bf16.msra.mxu1 %v2466_v2  ;;  %2136 = vmatprep.mubr.msk.bf16.mxu1 %vm2383_vm0, %v2382_v1 }
 0xddb   :  { %2134 = vmatprep.subr.bf16.mxu1 %v2382_v1 }
 0xdde   :  { %2135 = vmatpush3.bf16.msra.mxu1 %v2475_v4 }
 0xddf   :  { %2140 = vmatprep.subr.bf16.mxu1 %v2382_v1 }
 0xea0   :  { %v1195_v0 = vpop.f32.mrb[24].mxu0 }
 0xea1   :  { %v1201_v3 = vadd.f32 %v1195_v0, %v173_v63  ;;  %v2114_v5 = vpop.f32.mrb[25].mxu0 }
 0xea2   :  { %v1198_v6 = vpop.f32.mrb[26].mxu0 }
 0xea3   :  { %2319 = vtanh.f32 %v1201_v3  ;;  %v2115_v7 = vpop.f32.mrb[27].mxu0  ;;  %v1875_v43 = vmul.f32 -1.442695, %v1201_v3 }
 0xeac   :  { %v1130_v8 = vpop.f32.mrb[20].mxu1 }
 0xead   :  { %v2320_v11 = vpop.eup %2319  ;;  %v2192_v12 = vadd.f32 %v2593_v55, %v1130_v8  ;;  %v2106_v13 = vpop.f32.mrb[21].mxu1 }
 0xeae   :  { %1211 = vrot.lane.b32.xlu0 %v2320_v11, %s2384_s22  ;;  %v1133_v14 = vpop.f32.mrb[22].mxu1 }
 0xeaf   :  { %2321 = vtanh.f32 %v2192_v12  ;;  %v2107_v16 = vpop.f32.mrb[23].mxu1  ;;  %v1873_v18 = vmul.f32 -1.442695, %v2192_v12 }
 0xeb0   :  { %2323 = vpow2.f32 %v1875_v43 }
 0xeb1   :  { %2325 = vpow2.f32 %v1873_v18 }
 0xeb9   :  { %v2322_v17 = vpop.eup %2321 }
 0xeba   :  { %1146 = vrot.lane.b32.xlu1 %v2322_v17, %s2384_s22  ;;  %v2324_v19 = vpop.eup %2323 }
 0xebb   :  { %v1205_v20 = vadd.f32 1.0, %v2324_v19  ;;  %v2326_v21 = vpop.eup %2325 }
 0xebc   :  { %v1140_v22 = vadd.f32 1.0, %v2326_v21 }
 0xebd   :  { %2327 = vrcp.f32 %v1205_v20 }
 0xebe   :  { %2329 = vrcp.f32 %v1140_v22 }
 0xec7   :  { %v2328_v23 = vpop.eup %2327 }
 0xec8   :  { %v2330_v26 = vpop.eup %2329  ;;  %v1209_v41 = vmul.f32 %v2328_v23, %v2724_v49 }
 0xec9   :  { %v1144_v31 = vmul.f32 %v2330_v26, %v2728_v53 }
 0xf20   :  { %v1212_v24 = vpop.permute.xlu0 %1211 }
 0xf21   :  { %v1214_v25 = vmul.f32 %v2328_v23, %v1212_v24 }
 0xf23   :  { %1216 = vrot.lane.b32.xlu0 %v1214_v25, %s2384_s22 }
 0xf2c   :  { %v1147_v27 = vpop.permute.xlu1 %1146 }
 0xf2d   :  { %v1149_v28 = vmul.f32 %v2330_v26, %v1147_v27 }
 0xf2f   :  { %1151 = vrot.lane.b32.xlu1 %v1149_v28, %s2384_s22 }
 0xf95   :  { %v1217_v29 = vpop.permute.xlu0 %1216 }
 0xf96   :  { %v2764_v30 = vadd.f32 %v1217_v29, %v1209_v41 }
 0xf98   :  { %2331 = vtanh.f32 %v2764_v30 }
 0xfa1   :  { %v1152_v32 = vpop.permute.xlu1 %1151 }
 0xfa2   :  { %v2332_v33 = vpop.eup %2331  ;;  %v2768_v36 = vadd.f32 %v1152_v32, %v1144_v31 }
 0xfa3   :  { %1222 = vrot.lane.b32.xlu0 %v2332_v33, %s2384_s22 }
 0xfa4   :  { %2333 = vtanh.f32 %v2768_v36 }
 0xfae   :  { %v2334_v37 = vpop.eup %2333 }
 0xfaf   :  { %1157 = vrot.lane.b32.xlu1 %v2334_v37, %s2384_s22 }
0x1015   :  { %v1223_v38 = vpop.permute.xlu0 %1222 }
0x1016   :  { %v1225_v39 = vmul.f32 %v2328_v23, %v1223_v38 }
0x1018   :  { %v1226_v45 = vpack.c.bf16 %v1225_v39, %v1225_v39 }
0x101a   :  { %1229 = vrot.lane.b32.xlu0 %v1226_v45, %s2385_s0 }
0x1021   :  { %v1158_v15 = vpop.permute.xlu1 %1157 }
0x1022   :  { %v1160_v47 = vmul.f32 %v2330_v26, %v1158_v15 }
0x1024   :  { %v1227_v48 = vpack.c.bf16 %v1160_v47, %v1160_v47 }
0x1026   :  { %1275 = vrot.lane.b32.xlu1 %v1227_v48, %s2385_s0 }
0x108c   :  { %v1230_v49 = vpop.permute.xlu0 %1229 }
0x108d   :  { %2121 = vmatmul.mubr.msk.bf16.vlgmr.msra.gmra.mrb[28].mxu0 %vm106_vm1, %v1230_v49  ;;  %2137 = vmatmul.mubr.msk.bf16.vlgmr.msra.gmra.mrb[24].mxu1 %vm106_vm1, %v1230_v49 }
0x108e   :  { %2125 = vmatpush3.bf16.msra.mxu0 %v2557_v44  ;;  %2128 = vmatprep.mubr.msk.bf16.mxu0 %vm2383_vm0, %v2382_v1 }
0x108f   :  { %2126 = vmatprep.subr.bf16.mxu0 %v2382_v1  ;;  %2141 = vmatpush3.bf16.msra.mxu1 %v2529_v34 }
0x1090   :  { %2142 = vmatprep.subr.bf16.mxu1 %v2382_v1  ;;  %2144 = vmatprep.mubr.msk.bf16.mxu1 %vm2383_vm0, %v2382_v1 }
0x1092   :  { %2127 = vmatpush3.bf16.msra.mxu0 %v2565_v46 }
0x1093   :  { %2156 = vmatprep.subr.bf16.mxu0 %v2382_v1  ;;  %2143 = vmatpush3.bf16.msra.mxu1 %v2537_v35 }
0x1094   :  { %2148 = vmatprep.subr.bf16.mxu1 %v2382_v1 }
0x1098   :  { %v1276_v50 = vpop.permute.xlu1 %1275 }
0x1099   :  { %2129 = vmatmul.mubr.msk.bf16.vlgmr.msra.gmra.mrb[28].mxu0 %vm106_vm1, %v1276_v50 }
0x109a   :  { %2157 = vmatpush3.bf16.msra.mxu0 %v2466_v2  ;;  %2160 = vmatprep.mubr.msk.bf16.mxu0 %vm2383_vm0, %v2382_v1 }
0x109b   :  { %2158 = vmatprep.subr.bf16.mxu0 %v2382_v1 }
0x109e   :  { %2159 = vmatpush3.bf16.msra.mxu0 %v2475_v4 }
0x109f   :  { %2164 = vmatprep.subr.bf16.mxu0 %v2382_v1 }
0x1160   :  { %v1379_v52 = vpop.f32.mrb[24].mxu1 }
0x1161   :  { %v1385_v53 = vadd.f32 %v1379_v52, %v178_v51  ;;  %v2138_v54 = vpop.f32.mrb[25].mxu1 }
0x1162   :  { %v1382_v56 = vpop.f32.mrb[26].mxu1 }
0x1163   :  { %2335 = vtanh.f32 %v1385_v53  ;;  %v2139_v10 = vpop.f32.mrb[27].mxu1  ;;  %v1880_v9 = vmul.f32 -1.442695, %v1385_v53 }
0x116c   :  { %v1314_v57 = vpop.f32.mrb[28].mxu0 }
0x116d   :  { %v2336_v2 = vpop.eup %2335  ;;  %v2193_v58 = vadd.f32 %v2593_v55, %v1314_v57  ;;  %v2130_v59 = vpop.f32.mrb[29].mxu0 }
0x116e   :  { %v1317_v60 = vpop.f32.mrb[30].mxu0  ;;  %1395 = vrot.lane.b32.xlu0 %v2336_v2, %s2384_s22 }
0x116f   :  { %2337 = vtanh.f32 %v2193_v58  ;;  %v2131_v4 = vpop.f32.mrb[31].mxu0  ;;  %v1878_v40 = vmul.f32 -1.442695, %v2193_v58 }
0x1170   :  { %2339 = vpow2.f32 %v1880_v9 }
0x1171   :  { %2341 = vpow2.f32 %v1878_v40 }
0x1179   :  { %v2338_v61 = vpop.eup %2337 }
0x117a   :  { %1330 = vrot.lane.b32.xlu1 %v2338_v61, %s2384_s22  ;;  %v2340_v62 = vpop.eup %2339 }
0x117b   :  { %v1389_v63 = vadd.f32 1.0, %v2340_v62  ;;  %v2342_v0 = vpop.eup %2341 }
0x117c   :  { %v1324_v3 = vadd.f32 1.0, %v2342_v0 }
0x117d   :  { %2343 = vrcp.f32 %v1389_v63 }
0x117e   :  { %2345 = vrcp.f32 %v1324_v3 }
0x1187   :  { %v2344_v5 = vpop.eup %2343 }
0x1188   :  { %v2346_v8 = vpop.eup %2345  ;;  %v1393_v13 = vmul.f32 %v2344_v5, %v2764_v30 }
0x1189   :  { %v1328_v17 = vmul.f32 %v2346_v8, %v2768_v36 }
0x11e0   :  { %v1396_v6 = vpop.permute.xlu0 %1395 }
0x11e1   :  { %v1398_v7 = vmul.f32 %v2344_v5, %v1396_v6  ;;  %v2380_v6 = vld [vmem:[%s2907_s5] sm:$0xff]  }
0x11e3   :  { %1400 = vrot.lane.b32.xlu0 %v1398_v7, %s2384_s22  ;;  %v2381_v7 = vld [vmem:[%s2907_s5 + $0x8] sm:$0xff]  }
0x11ec   :  { %v1331_v11 = vpop.permute.xlu1 %1330 }
0x11ed   :  { %v1333_v12 = vmul.f32 %v2346_v8, %v1331_v11 }
0x11ef   :  { %1335 = vrot.lane.b32.xlu1 %v1333_v12, %s2384_s22 }
0x1255   :  { %v1401_v14 = vpop.permute.xlu0 %1400 }
0x1256   :  { %v2804_v16 = vadd.f32 %v1401_v14, %v1393_v13 }
0x1258   :  { %2347 = vtanh.f32 %v2804_v16 }
0x1261   :  { %v1336_v43 = vpop.permute.xlu1 %1335 }
0x1262   :  { %v2348_v18 = vpop.eup %2347  ;;  %v2808_v19 = vadd.f32 %v1336_v43, %v1328_v17 }
0x1263   :  { %1406 = vrot.lane.b32.xlu0 %v2348_v18, %s2384_s22 }
0x1264   :  { %2349 = vtanh.f32 %v2808_v19 }
0x126e   :  { %v2350_v20 = vpop.eup %2349 }
0x126f   :  { %1341 = vrot.lane.b32.xlu1 %v2350_v20, %s2384_s22 }
0x12d5   :  { %v1407_v21 = vpop.permute.xlu0 %1406 }
0x12d6   :  { %v1409_v22 = vmul.f32 %v2344_v5, %v1407_v21 }
0x12d8   :  { %v1410_v23 = vpack.c.bf16 %v1409_v22, %v1409_v22 }
0x12da   :  { %1413 = vrot.lane.b32.xlu0 %v1410_v23, %s2385_s0 }
0x12e1   :  { %v1342_v24 = vpop.permute.xlu1 %1341 }
0x12e2   :  { %v1344_v25 = vmul.f32 %v2346_v8, %v1342_v24 }
0x12e4   :  { %v1411_v26 = vpack.c.bf16 %v1344_v25, %v1344_v25  ;;  %v2245_v25 = vld [vmem:[%s2909_s9] sm:$0xff]  }
0x12e6   :  { %1459 = vrot.lane.b32.xlu1 %v1411_v26, %s2385_s0  ;;  %v2246_v26 = vld [vmem:[%s2909_s9 + $0x8] sm:$0xff]  }
0x134c   :  { %v1414_v27 = vpop.permute.xlu0 %1413 }
0x134d   :  { %2145 = vmatmul.mubr.msk.bf16.vlgmr.msra.gmra.mrb[28].mxu1 %vm106_vm1, %v1414_v27  ;;  %2161 = vmatmul.mubr.msk.bf16.vlgmr.msra.gmra.mrb[32].mxu0 %vm106_vm1, %v1414_v27 }
0x134e   :  { %2149 = vmatpush3.bf16.msra.mxu1 %v2557_v44  ;;  %2152 = vmatprep.mubr.msk.bf16.mxu1 %vm2383_vm0, %v2382_v1 }
0x134f   :  { %2150 = vmatprep.subr.bf16.mxu1 %v2382_v1  ;;  %2165 = vmatpush3.bf16.msra.mxu0 %v2529_v34  ;;  %v2379_v34 = vld [vmem:[%s2904_s3] ss:$0 sm:$0xff] }
0x1350   :  { %2166 = vmatprep.subr.bf16.mxu0 %v2382_v1  ;;  %2168 = vmatprep.mubr.msk.bf16.mxu0 %vm2383_vm0, %v2382_v1  ;;  %v181_v28 = vadd.f32 %v2379_v34, %v2550_v42 }
0x1352   :  { %2151 = vmatpush3.bf16.msra.mxu1 %v2565_v46 }
0x1353   :  { %2167 = vmatpush3.bf16.msra.mxu0 %v2537_v35  ;;  %2180 = vmatprep.subr.bf16.mxu1 %v2382_v1 }
0x1354   :  { %2172 = vmatprep.subr.bf16.mxu0 %v2382_v1 }
0x1358   :  { %v1460_v44 = vpop.permute.xlu1 %1459 }
0x1359   :  { %2153 = vmatmul.mubr.msk.bf16.vlgmr.msra.gmra.mrb[28].mxu1 %vm106_vm1, %v1460_v44 }
0x135a   :  { %2184 = vmatprep.mubr.msk.bf16.mxu1 %vm2383_vm0, %v2382_v1  ;;  %2181 = vmatpush3.bf16.msra.mxu1 %v2245_v25 }
0x135b   :  { %2182 = vmatprep.subr.bf16.mxu1 %v2382_v1 }
0x135e   :  { %2183 = vmatpush3.bf16.msra.mxu1 %v2246_v26 }
0x1420   :  { %v1563_v41 = vpop.f32.mrb[32].mxu0 }
0x1421   :  { %v1569_v46 = vadd.f32 %v1563_v41, %v181_v28  ;;  %v2162_v29 = vpop.f32.mrb[33].mxu0 }
0x1422   :  { %v1566_v35 = vpop.f32.mrb[34].mxu0 }
0x1423   :  { %2351 = vtanh.f32 %v1569_v46  ;;  %v2163_v30 = vpop.f32.mrb[35].mxu0  ;;  %v1885_v42 = vmul.f32 -1.442695, %v1569_v46 }
0x142c   :  { %v1498_v31 = vpop.f32.mrb[28].mxu1 }
0x142d   :  { %v2352_v32 = vpop.eup %2351  ;;  %v2194_v33 = vadd.f32 %v2593_v55, %v1498_v31  ;;  %v2154_v36 = vpop.f32.mrb[29].mxu1 }
0x142e   :  { %1579 = vrot.lane.b32.xlu0 %v2352_v32, %s2384_s22  ;;  %v1501_v37 = vpop.f32.mrb[30].mxu1 }
0x142f   :  { %2353 = vtanh.f32 %v2194_v33  ;;  %v2155_v38 = vpop.f32.mrb[31].mxu1  ;;  %v1883_v45 = vmul.f32 -1.442695, %v2194_v33 }
0x1430   :  { %2355 = vpow2.f32 %v1885_v42 }
0x1431   :  { %2357 = vpow2.f32 %v1883_v45 }
0x1439   :  { %v2354_v39 = vpop.eup %2353 }
0x143a   :  { %1514 = vrot.lane.b32.xlu1 %v2354_v39, %s2384_s22  ;;  %v2356_v15 = vpop.eup %2355 }
0x143b   :  { %v1573_v47 = vadd.f32 1.0, %v2356_v15  ;;  %v2358_v48 = vpop.eup %2357 }
0x143c   :  { %v1508_v49 = vadd.f32 1.0, %v2358_v48 }
0x143d   :  { %2359 = vrcp.f32 %v1573_v47 }
0x143e   :  { %2361 = vrcp.f32 %v1508_v49 }
0x1447   :  { %v2360_v50 = vpop.eup %2359 }
0x1448   :  { %v2362_v53 = vpop.eup %2361  ;;  %v1577_v10 = vmul.f32 %v2360_v50, %v2804_v16 }
0x1449   :  { %v1512_v58 = vmul.f32 %v2362_v53, %v2808_v19 }
0x14a0   :  { %v1580_v51 = vpop.permute.xlu0 %1579 }
0x14a1   :  { %v1582_v52 = vmul.f32 %v2360_v50, %v1580_v51 }
0x14a3   :  { %1584 = vrot.lane.b32.xlu0 %v1582_v52, %s2384_s22 }
0x14ac   :  { %v1515_v54 = vpop.permute.xlu1 %1514 }
0x14ad   :  { %v1517_v56 = vmul.f32 %v2362_v53, %v1515_v54 }
0x14af   :  { %1519 = vrot.lane.b32.xlu1 %v1517_v56, %s2384_s22 }
0x1515   :  { %v1585_v57 = vpop.permute.xlu0 %1584 }
0x1516   :  { %v1587_v2 = vadd.f32 %v1585_v57, %v1577_v10 }
0x1518   :  { %2363 = vtanh.f32 %v1587_v2 }
0x1521   :  { %v1520_v59 = vpop.permute.xlu1 %1519 }
0x1522   :  { %v2364_v60 = vpop.eup %2363  ;;  %v1522_v4 = vadd.f32 %v1520_v59, %v1512_v58 }
0x1523   :  { %1590 = vrot.lane.b32.xlu0 %v2364_v60, %s2384_s22 }
0x1524   :  { %2365 = vtanh.f32 %v1522_v4 }
0x152e   :  { %v2366_v61 = vpop.eup %2365 }
0x152f   :  { %1525 = vrot.lane.b32.xlu1 %v2366_v61, %s2384_s22 }
0x1595   :  { %v1591_v9 = vpop.permute.xlu0 %1590 }
0x1596   :  { %v2845_v40 = vmul.f32 %v2360_v50, %v1591_v9 }
0x1598   :  { %v1594_v62 = vpack.c.bf16 %v2845_v40, %v2845_v40 }
0x159a   :  { %1597 = vrot.lane.b32.xlu0 %v1594_v62, %s2385_s0 }
0x15a1   :  { %v1526_v63 = vpop.permute.xlu1 %1525 }
0x15a2   :  { %v1528_v0 = vmul.f32 %v2362_v53, %v1526_v63 }
0x15a4   :  { %v1595_v3 = vpack.c.bf16 %v1528_v0, %v1528_v0 }
0x15a6   :  { %1643 = vrot.lane.b32.xlu1 %v1595_v3, %s2385_s0 }
0x160c   :  { %v1598_v5 = vpop.permute.xlu0 %1597 }
0x160d   :  { %2169 = vmatmul.mubr.msk.bf16.vlgmr.msra.gmra.mrb[36].mxu0 %vm106_vm1, %v1598_v5 }
0x160e   :  { %2173 = vmatpush3.bf16.msra.mxu0 %v2380_v6  ;;  %2176 = vmatprep.mubr.msk.bf16.mxu0 %vm2383_vm0, %v2382_v1 }
0x160f   :  { %2174 = vmatprep.subr.bf16.mxu0 %v2382_v1  ;;  %v1891_v1 = vld [vmem:[%s2911_s10] ss:$0 sm:$0xff] }
0x1612   :  { %2175 = vmatpush3.bf16.msra.mxu0 %v2381_v7 }
0x1618   :  { %v1644_v8 = vpop.permute.xlu1 %1643 }
0x1619   :  { %2177 = vmatmul.mubr.msk.bf16.vlgmr.msra.gmra.mrb[36].mxu0 %vm106_vm1, %v1644_v8 }
0x16ec   :  { %v1682_v11 = vpop.f32.mrb[36].mxu0 }
0x16ed   :  { %v2195_v12 = vadd.f32 %v2593_v55, %v1682_v11  ;;  %v2178_v13 = vpop.f32.mrb[37].mxu0 }
0x16ee   :  { %v1685_v14 = vpop.f32.mrb[38].mxu0 }
0x16ef   :  { %2367 = vtanh.f32 %v2195_v12  ;;  %v2179_v16 = vpop.f32.mrb[39].mxu0  ;;  %v1888_v43 = vmul.f32 -1.442695, %v2195_v12 }
0x16f1   :  { %2369 = vpow2.f32 %v1888_v43 }
0x16f9   :  { %v2368_v17 = vpop.eup %2367 }
0x16fa   :  { %1698 = vrot.lane.b32.xlu0 %v2368_v17, %s2384_s22 }
0x16fb   :  { %v2370_v18 = vpop.eup %2369 }
0x16fc   :  { %v1692_v19 = vadd.f32 1.0, %v2370_v18 }
0x16fe   :  { %2371 = vrcp.f32 %v1692_v19 }
0x1708   :  { %v2372_v20 = vpop.eup %2371 }
0x1709   :  { %v1696_v23 = vmul.f32 %v2372_v20, %v1522_v4 }
0x176c   :  { %v1699_v21 = vpop.permute.xlu0 %1698 }
0x176d   :  { %v1701_v22 = vmul.f32 %v2372_v20, %v1699_v21 }
0x176f   :  { %1703 = vrot.lane.b32.xlu1 %v1701_v22, %s2384_s22 }
0x17e1   :  { %v1704_v24 = vpop.permute.xlu1 %1703 }
0x17e2   :  { %v1706_v55 = vadd.f32 %v1704_v24, %v1696_v23 }
0x17e4   :  { %2373 = vtanh.f32 %v1706_v55 }
0x17ee   :  { %v2374_v27 = vpop.eup %2373 }
0x17ef   :  { %1709 = vrot.lane.b32.xlu0 %v2374_v27, %s2384_s22 }
0x1861   :  { %v1710_v44 = vpop.permute.xlu0 %1709 }
0x1862   :  { %v1712_v34 = vmul.f32 %v2372_v20, %v1710_v44 }
0x1864   :  { %v1735_v28 = vpack.c.bf16 %v1712_v34, %v1712_v34 }
0x1866   :  { %1748 = vrot.lane.b32.xlu1 %v1735_v28, %s2385_s0 }
0x186a   :  { %1719 = vrot.lane.b32.xlu1 %v1587_v2, %s2386_s29 }
0x18d8   :  { %v1749_v41 = vpop.permute.xlu1 %1748 }
0x18d9   :  { %2185 = vmatmul.mubr.msk.bf16.vlgmr.msra.gmra.mrb[32].mxu1 %vm106_vm1, %v1749_v41 }
0x18dc   :  { %v1720_v46 = vpop.permute.xlu1 %1719 }
0x18dd   :  { %1722 = vst.msk [vmem:[%s2910_s13] sm:$0xff] %vm106_vm1, %v1720_v46 }
0x19ac   :  { %v1799_v29 = vpop.f32.mrb[32].mxu1 }
0x19ad   :  { %v1800_v35 = vadd.f32 %v1891_v1, %v1799_v29  ;;  %v2186_v30 = vpop.f32.mrb[33].mxu1 }
0x19ae   :  { %v1802_v31 = vpop.f32.mrb[34].mxu1 }
0x19af   :  { %1805 = vmax.xlane.f32.xlu0 %v1800_v35  ;;  %v2187_v32 = vpop.f32.mrb[35].mxu1 }
0x19c5   :  { %1714 = vrot.lane.b32.xlu0 %v2845_v40, %s2385_s0 }
0x19c9   :  { %1724 = vrot.lane.b32.xlu0 %v1712_v34, %s2385_s0 }
0x1a3c   :  { %v1806_v33 = vpop.xlane.xlu0 %1805 }
0x1a3d   :  { %v1807_v36 = vsub.f32 %v1800_v35, %v1806_v33 }
0x1a3f   :  { %v1808_v37 = vmul.f32 1.442695, %v1807_v36 }
0x1a40   :  { %v1715_v38 = vpop.permute.xlu0 %1714 }
0x1a41   :  { %2375 = vpow2.f32 %v1808_v37  ;;  %1717 = vst.msk [vmem:[%s2912_s12] sm:$0xff] %vm106_vm1, %v1715_v38 }
0x1a44   :  { %v1725_v39 = vpop.permute.xlu0 %1724 }
0x1a45   :  { %1889 = vst.msk [vmem:[%s2912_s12 + $0x8] sm:$0xff] %vm106_vm1, %v1725_v39 }
0x1a4b   :  { %v2376_v42 = vpop.eup %2375 }
0x1a4c   :  { %1810 = vadd.xlane.f32.xlu1 %v2376_v42 }
0x1a5d   :  { %1730 = vrot.lane.b32.xlu1 %v1706_v55, %s2386_s29 }
0x1ad9   :  { %v1811_v45 = vpop.xlane.xlu1 %1810 }
0x1ada   :  { %2377 = vlog2.f32 %v1811_v45 }
0x1add   :  { %v1731_v15 = vpop.permute.xlu1 %1730 }
0x1ade   :  { %1890 = vst.msk [vmem:[%s2910_s13 + $0x8] sm:$0xff] %vm106_vm1, %v1731_v15 }
0x1ae4   :  { %v2378_v47 = vpop.eup %2377 }
0x1ae5   :  { %v1813_v48 = vmul.f32 0.6931472, %v2378_v47 }
0x1ae7   :  { %v1814_v49 = vadd.f32 %v1813_v48, %v1806_v33 }
0x1ae9   :  { %v1815_v50 = vsub.f32 %v1800_v35, %v1814_v49 }
0x1aeb   :  { %1816 = vst [vmem:[%s2913_s11] sm:$0xff] %v1815_v50 }

</bundles_post_ra>
